<compile_context>
chip_gen: v7x
topology: tpu7x:2x2x1
jax: 0.10.0
libtpu: 0.0.40
codegen_flags: <defaults>
</compile_context>

<pallas_src>
import functools

import jax
import jax.numpy as jnp
from jax.experimental import pallas as pl
from jax.experimental.pallas import tpu as pltpu


def autopad(k, p=None):
    if p is None:
        p = k // 2 if isinstance(k, int) else [x // 2 for x in k]
    return p


def _round_up(x, m):
    return (x + m - 1) // m * m


def _gemm_bn_hswish_kernel(p_ref, w_ref, scale_ref, shift_ref, o_ref, *, act):
    """One (TM, Kp) x (Kp, TC2) MXU matmul + folded-BN + Hardswish epilogue.

    p_ref     : (1, TM, Kp)   im2col patches (bf16), lane-dense (Kp % 128 == 0)
    w_ref     : (Kp, TC2)     (kh, kw, c1)-ordered conv weights (bf16)
    scale_ref : (1, TC2)      BN scale = gamma / sqrt(var + eps)   (f32)
    shift_ref : (1, TC2)      BN shift = beta - mean * scale       (f32)
    o_ref     : (1, TM, TC2)  lane-dense output slab
    """
    acc = jnp.dot(p_ref[0], w_ref[...], preferred_element_type=jnp.float32)

    # BatchNorm2d (inference) folded into per-channel scale/shift.
    y = acc * scale_ref[...] + shift_ref[...]

    if act:
        # Hardswish: x * hardtanh(x + 3, 0, 6) / 6   (multiply, not divide)
        y = y * (jnp.clip(y + 3.0, 0.0, 6.0) * (1.0 / 6.0))

    o_ref[0] = y.astype(o_ref.dtype)


def conv_bn_hswish(x_nchw, weight_oihw, scale, shift, *, stride=1, padding=None,
                   act=True, tile_m=256, tile_c2=256,
                   compute_dtype=jnp.bfloat16, out_dtype=None):
    """Pallas implementation of Conv.forward (conv -> bn(eval) -> Hardswish)."""
    N, C1, H, W = x_nchw.shape
    C2, C1w, K, K2 = weight_oihw.shape
    assert C1w == C1 and K == K2, "groups=1, square kernels only"
    p = autopad(K, padding)
    S = stride

    Ho = (H + 2 * p - K) // S + 1
    Wo = (W + 2 * p - K) // S + 1
    M = Ho * Wo

    if out_dtype is None:
        out_dtype = x_nchw.dtype

    # ---- tiling ---------------------------------------------------------
    # ~256 output pixels per grid step (multiple of 8 sublanes).
    TM = min(tile_m, _round_up(M, 8))
    n_m = pl.cdiv(M, TM)
    M_pad = n_m * TM

    KK = K * K * C1
    Kp = _round_up(KK, 128)         # lane-dense contraction (unmasked LHS)
    C2p = _round_up(C2, 128)        # lane-dense output channels (unmasked vst)
    TC2 = min(tile_c2, C2p)
    n_c2 = C2p // TC2

    # ---- layout glue (XLA, once per call, out of the hot kernel) --------
    # NCHW -> NHWC, spatial zero-pad.
    x_nhwc = jnp.transpose(x_nchw, (0, 2, 3, 1))
    x_pad = jnp.pad(x_nhwc, ((0, 0), (p, p), (p, p), (0, 0)))

    # im2col in the wrapper: removes the lane-sparse C1-minor image from VMEM
    # and all in-kernel tap slicing; the kernel degenerates to a dense GEMM.
    # Stride handling happens here too, so the kernel never takes strided
    # sublane slices.  Contraction index ordered (kh, kw, c1).
    cols = []
    for kh in range(K):
        for kw in range(K):
            cols.append(x_pad[:, kh:kh + (Ho - 1) * S + 1:S,
                              kw:kw + (Wo - 1) * S + 1:S, :])   # (N, Ho, Wo, C1)
    patches = jnp.concatenate(cols, axis=-1).reshape(N, M, KK)
    patches = jnp.pad(patches, ((0, 0), (0, M_pad - M), (0, Kp - KK)))
    patches = patches.astype(compute_dtype)

    # OIHW -> (K*K*C1, C2p) with the same (kh, kw, c1) contraction ordering;
    # zero-pad rows/cols and cast once.
    w_kkic = jnp.transpose(weight_oihw, (2, 3, 1, 0)).reshape(KK, C2)
    w_kkic = jnp.pad(w_kkic, ((0, Kp - KK), (0, C2p - C2))).astype(compute_dtype)

    scale_p = jnp.pad(scale.astype(jnp.float32), (0, C2p - C2)).reshape(1, C2p)
    shift_p = jnp.pad(shift.astype(jnp.float32), (0, C2p - C2)).reshape(1, C2p)

    kernel = functools.partial(_gemm_bn_hswish_kernel, act=act)

    # VMEM budget: double-buffered patch + output tiles, weights, params.
    # Cap at 48 MiB so a big configuration still fits v7x's 64 MiB VMEM.
    tile_bytes = (2 * TM * Kp * 2) + (2 * Kp * TC2 * 2) + (2 * TM * TC2 * 4) \
                 + 4 * C2p * 4
    vmem_limit = min(48 * 1024 * 1024, max(16 * 1024 * 1024, 4 * tile_bytes))

    def _call(single_buffer_consts):
        const_kwargs = (dict(pipeline_mode=pl.Buffered(1))
                        if single_buffer_consts else {})
        grid_spec = pltpu.PrefetchScalarGridSpec(
            num_scalar_prefetch=0,
            grid=(N, n_m, n_c2),
            in_specs=[
                # Patches: block index constant over c2 => no re-DMA across c2.
                pl.BlockSpec((1, TM, Kp), lambda n, m, c: (n, m, 0)),
                # Constants: resident in VMEM; single-buffered when supported.
                pl.BlockSpec((Kp, TC2), lambda n, m, c: (0, c), **const_kwargs),
                pl.BlockSpec((1, TC2), lambda n, m, c: (0, c), **const_kwargs),
                pl.BlockSpec((1, TC2), lambda n, m, c: (0, c), **const_kwargs),
            ],
            out_specs=pl.BlockSpec((1, TM, TC2), lambda n, m, c: (n, m, c)),
        )
        return pl.pallas_call(
            kernel,
            out_shape=jax.ShapeDtypeStruct((N, M_pad, C2p), out_dtype),
            grid_spec=grid_spec,
            compiler_params=pltpu.CompilerParams(
                # TODO(synk): tag one axis pltpu.CORE_PARALLEL on v7x (2 TCs)
                #             once the axis extent guarantees work per core.
                dimension_semantics=("parallel", "parallel", "parallel"),
                vmem_limit_bytes=vmem_limit,
            ),
        )(patches, w_kkic, scale_p, shift_p)

    try:
        out = _call(True)
    except Exception:
        # pipeline_mode=pl.Buffered(1) not supported by this JAX/libtpu:
        # fall back to default double-buffering of the constant operands.
        out = _call(False)

    # Drop M / channel padding, back to NCHW (PyTorch layout).
    out = out[:, :M, :C2].reshape(N, Ho, Wo, C2)
    return jnp.transpose(out, (0, 3, 1, 2))


if __name__ == "__main__":
    # Conv(c1=4, c2=8, k=3, s=1) on a (2, 4, 16, 16) input.
    N, C1, C2, H, W, K, S = 2, 4, 8, 16, 16, 3, 1
    eps = 1e-5

    key = jax.random.PRNGKey(0)
    kx, kw, kg, kb, km, kv = jax.random.split(key, 6)

    x = jax.random.normal(kx, (N, C1, H, W), jnp.float32)
    # Deterministic synthetic parameters (no checkpoint load).
    weight = jax.random.normal(kw, (C2, C1, K, K), jnp.float32) * 0.1  # conv, bias=False
    gamma = 1.0 + 0.1 * jax.random.normal(kg, (C2,), jnp.float32)      # bn.weight
    beta = 0.1 * jax.random.normal(kb, (C2,), jnp.float32)             # bn.bias
    running_mean = 0.1 * jax.random.normal(km, (C2,), jnp.float32)
    running_var = 1.0 + 0.1 * jax.random.uniform(kv, (C2,), jnp.float32)

    # Fold eval-mode BatchNorm into per-channel scale/shift.
    scale = gamma / jnp.sqrt(running_var + eps)
    shift = beta - running_mean * scale

    out = conv_bn_hswish(x, weight, scale, shift, stride=S, padding=None, act=True)
    out = jax.block_until_ready(out)

    # Pure-JAX f32 reference (kernel feeds the MXU in bf16, accumulates in f32
    # -> compare with bf16-appropriate tolerance).
    p = autopad(K)
    ref = jax.lax.conv_general_dilated(
        x, weight, window_strides=(S, S), padding=[(p, p), (p, p)],
        dimension_numbers=("NCHW", "OIHW", "NCHW"))
    ref = ref * scale[None, :, None, None] + shift[None, :, None, None]
    ref = ref * jnp.clip(ref + 3.0, 0.0, 6.0) / 6.0

    assert out.shape == (N, C2, H, W)
    max_err = float(jnp.max(jnp.abs(out - ref)))
    assert jnp.allclose(out, ref, atol=3e-2, rtol=3e-2), max_err
    print("KERNEL_OK")
</pallas_src>

<mosaic_0001>
module attributes {stable_mosaic.version = 11 : i64} {
  func.func @_gemm_bn_hswish_kernel(%arg0: i32, %arg1: i32, %arg2: i32, %arg3: memref<1x256x128xbf16, #tpu.memory_space<vmem>>, %arg4: memref<128x128xbf16, #tpu.memory_space<vmem>>, %arg5: memref<1x128xf32, #tpu.memory_space<vmem>>, %arg6: memref<1x128xf32, #tpu.memory_space<vmem>>, %arg7: memref<1x256x128xf32, #tpu.memory_space<vmem>>) attributes {dimension_semantics = [#tpu.dimension_semantics<parallel>, #tpu.dimension_semantics<parallel>, #tpu.dimension_semantics<parallel>], iteration_bounds = array<i64: 2, 1, 1>, scalar_prefetch = 0 : i64, scratch_operands = 0 : i64, tpu.core_type = #tpu.core_type<tc>, window_params = [{transform_indices = @transform_0, window_bounds = array<i64: 1, 256, 128>}, {pipeline_mode = #tpu.pipeline_mode<synchronous>, transform_indices = @transform_1, window_bounds = array<i64: 128, 128>}, {pipeline_mode = #tpu.pipeline_mode<synchronous>, transform_indices = @transform_2, window_bounds = array<i64: 1, 128>}, {pipeline_mode = #tpu.pipeline_mode<synchronous>, transform_indices = @transform_3, window_bounds = array<i64: 1, 128>}, {transform_indices = @transform_4, window_bounds = array<i64: 1, 256, 128>}]} {
    %c0 = arith.constant 0 : index
    %c0_0 = arith.constant 0 : index
    %c0_1 = arith.constant 0 : index
    %0 = vector.load %arg3[%c0, %c0_0, %c0_1] : memref<1x256x128xbf16, #tpu.memory_space<vmem>>, vector<1x256x128xbf16>
    %1 = vector.shape_cast %0 : vector<1x256x128xbf16> to vector<256x128xbf16>
    %c0_2 = arith.constant 0 : index
    %c0_3 = arith.constant 0 : index
    %2 = vector.load %arg4[%c0_2, %c0_3] : memref<128x128xbf16, #tpu.memory_space<vmem>>, vector<128x128xbf16>
    %cst = arith.constant dense<0.000000e+00> : vector<256x128xf32>
    %3 = tpu.matmul %1, %2, %cst {dimension_numbers = #tpu.dot_dimension_numbers<[1], [0], [0], [1], [0, 0, 1, 1], [], []>} : vector<256x128xbf16>, vector<128x128xbf16>, vector<256x128xf32> -> vector<256x128xf32>
    %c0_4 = arith.constant 0 : index
    %c0_5 = arith.constant 0 : index
    %4 = vector.load %arg5[%c0_4, %c0_5] : memref<1x128xf32, #tpu.memory_space<vmem>>, vector<1x128xf32>
    %5 = vector.broadcast %4 : vector<1x128xf32> to vector<256x128xf32>
    %6 = arith.mulf %3, %5 : vector<256x128xf32>
    %c0_6 = arith.constant 0 : index
    %c0_7 = arith.constant 0 : index
    %7 = vector.load %arg6[%c0_6, %c0_7] : memref<1x128xf32, #tpu.memory_space<vmem>>, vector<1x128xf32>
    %8 = vector.broadcast %7 : vector<1x128xf32> to vector<256x128xf32>
    %9 = arith.addf %6, %8 : vector<256x128xf32>
    %cst_8 = arith.constant 3.000000e+00 : f32
    %10 = vector.broadcast %cst_8 : f32 to vector<256x128xf32>
    %11 = arith.addf %9, %10 : vector<256x128xf32>
    %cst_9 = arith.constant 0.000000e+00 : f32
    %cst_10 = arith.constant 6.000000e+00 : f32
    %12 = vector.broadcast %cst_9 : f32 to vector<256x128xf32>
    %13 = arith.maximumf %12, %11 : vector<256x128xf32>
    %14 = vector.broadcast %cst_10 : f32 to vector<256x128xf32>
    %15 = arith.minimumf %14, %13 : vector<256x128xf32>
    %cst_11 = arith.constant 0.166666672 : f32
    %16 = vector.broadcast %cst_11 : f32 to vector<256x128xf32>
    %17 = arith.mulf %15, %16 : vector<256x128xf32>
    %18 = arith.mulf %9, %17 : vector<256x128xf32>
    %c0_12 = arith.constant 0 : index
    %c0_13 = arith.constant 0 : index
    %c0_14 = arith.constant 0 : index
    %19 = vector.load %arg7[%c0_12, %c0_13, %c0_14] : memref<1x256x128xf32, #tpu.memory_space<vmem>>, vector<1x256x128xf32>
    %20 = vector.shape_cast %19 : vector<1x256x128xf32> to vector<256x128xf32>
    %21 = vector.shape_cast %18 : vector<256x128xf32> to vector<1x256x128xf32>
    tpu.vector_store %arg7[%c0_12, %c0_13, %c0_14], %21 {strides = array<i32>} : memref<1x256x128xf32, #tpu.memory_space<vmem>>, vector<1x256x128xf32>,
    return
  }
  func.func @transform_0(%arg0: i32, %arg1: i32, %arg2: i32) -> (i32, i32, i32) {
    %c0_i32 = arith.constant 0 : i32
    %c0_i32_0 = arith.constant 0 : i32
    return %arg0, %arg1, %c0_i32 : i32, i32, i32
  }
  func.func @transform_1(%arg0: i32, %arg1: i32, %arg2: i32) -> (i32, i32) {
    %c0_i32 = arith.constant 0 : i32
    %c0_i32_0 = arith.constant 0 : i32
    return %c0_i32, %arg2 : i32, i32
  }
  func.func @transform_2(%arg0: i32, %arg1: i32, %arg2: i32) -> (i32, i32) {
    %c0_i32 = arith.constant 0 : i32
    %c0_i32_0 = arith.constant 0 : i32
    return %c0_i32, %arg2 : i32, i32
  }
  func.func @transform_3(%arg0: i32, %arg1: i32, %arg2: i32) -> (i32, i32) {
    %c0_i32 = arith.constant 0 : i32
    %c0_i32_0 = arith.constant 0 : i32
    return %c0_i32, %arg2 : i32, i32
  }
  func.func @transform_4(%arg0: i32, %arg1: i32, %arg2: i32) -> (i32, i32, i32) {
    %c0_i32 = arith.constant 0 : i32
    return %arg0, %arg1, %arg2 : i32, i32, i32
  }
}

module attributes {stable_mosaic.version = 11 : i64} {
  func.func @_gemm_bn_hswish_kernel(%arg0: i32, %arg1: i32, %arg2: i32, %arg3: memref<1x256x128xbf16, #tpu.memory_space<vmem>>, %arg4: memref<128x128xbf16, #tpu.memory_space<vmem>>, %arg5: memref<1x128xf32, #tpu.memory_space<vmem>>, %arg6: memref<1x128xf32, #tpu.memory_space<vmem>>, %arg7: memref<1x256x128xf32, #tpu.memory_space<vmem>>) attributes {dimension_semantics = [#tpu.dimension_semantics<parallel>, #tpu.dimension_semantics<parallel>, #tpu.dimension_semantics<parallel>], iteration_bounds = array<i64: 2, 1, 1>, scalar_prefetch = 0 : i64, scratch_operands = 0 : i64, tpu.core_type = #tpu.core_type<tc>, window_params = [{transform_indices = @transform_0, window_bounds = array<i64: 1, 256, 128>}, {transform_indices = @transform_1, window_bounds = array<i64: 128, 128>}, {transform_indices = @transform_2, window_bounds = array<i64: 1, 128>}, {transform_indices = @transform_3, window_bounds = array<i64: 1, 128>}, {transform_indices = @transform_4, window_bounds = array<i64: 1, 256, 128>}]} {
    %c0 = arith.constant 0 : index
    %c0_0 = arith.constant 0 : index
    %c0_1 = arith.constant 0 : index
    %0 = vector.load %arg3[%c0, %c0_0, %c0_1] : memref<1x256x128xbf16, #tpu.memory_space<vmem>>, vector<1x256x128xbf16>
    %1 = vector.shape_cast %0 : vector<1x256x128xbf16> to vector<256x128xbf16>
    %c0_2 = arith.constant 0 : index
    %c0_3 = arith.constant 0 : index
    %2 = vector.load %arg4[%c0_2, %c0_3] : memref<128x128xbf16, #tpu.memory_space<vmem>>, vector<128x128xbf16>
    %cst = arith.constant dense<0.000000e+00> : vector<256x128xf32>
    %3 = tpu.matmul %1, %2, %cst {dimension_numbers = #tpu.dot_dimension_numbers<[1], [0], [0], [1], [0, 0, 1, 1], [], []>} : vector<256x128xbf16>, vector<128x128xbf16>, vector<256x128xf32> -> vector<256x128xf32>
    %c0_4 = arith.constant 0 : index
    %c0_5 = arith.constant 0 : index
    %4 = vector.load %arg5[%c0_4, %c0_5] : memref<1x128xf32, #tpu.memory_space<vmem>>, vector<1x128xf32>
    %5 = vector.broadcast %4 : vector<1x128xf32> to vector<256x128xf32>
    %6 = arith.mulf %3, %5 : vector<256x128xf32>
    %c0_6 = arith.constant 0 : index
    %c0_7 = arith.constant 0 : index
    %7 = vector.load %arg6[%c0_6, %c0_7] : memref<1x128xf32, #tpu.memory_space<vmem>>, vector<1x128xf32>
    %8 = vector.broadcast %7 : vector<1x128xf32> to vector<256x128xf32>
    %9 = arith.addf %6, %8 : vector<256x128xf32>
    %cst_8 = arith.constant 3.000000e+00 : f32
    %10 = vector.broadcast %cst_8 : f32 to vector<256x128xf32>
    %11 = arith.addf %9, %10 : vector<256x128xf32>
    %cst_9 = arith.constant 0.000000e+00 : f32
    %cst_10 = arith.constant 6.000000e+00 : f32
    %12 = vector.broadcast %cst_9 : f32 to vector<256x128xf32>
    %13 = arith.maximumf %12, %11 : vector<256x128xf32>
    %14 = vector.broadcast %cst_10 : f32 to vector<256x128xf32>
    %15 = arith.minimumf %14, %13 : vector<256x128xf32>
    %cst_11 = arith.constant 0.166666672 : f32
    %16 = vector.broadcast %cst_11 : f32 to vector<256x128xf32>
    %17 = arith.mulf %15, %16 : vector<256x128xf32>
    %18 = arith.mulf %9, %17 : vector<256x128xf32>
    %c0_12 = arith.constant 0 : index
    %c0_13 = arith.constant 0 : index
    %c0_14 = arith.constant 0 : index
    %19 = vector.load %arg7[%c0_12, %c0_13, %c0_14] : memref<1x256x128xf32, #tpu.memory_space<vmem>>, vector<1x256x128xf32>
    %20 = vector.shape_cast %19 : vector<1x256x128xf32> to vector<256x128xf32>
    %21 = vector.shape_cast %18 : vector<256x128xf32> to vector<1x256x128xf32>
    tpu.vector_store %arg7[%c0_12, %c0_13, %c0_14], %21 {strides = array<i32>} : memref<1x256x128xf32, #tpu.memory_space<vmem>>, vector<1x256x128xf32>,
    return
  }
  func.func @transform_0(%arg0: i32, %arg1: i32, %arg2: i32) -> (i32, i32, i32) {
    %c0_i32 = arith.constant 0 : i32
    %c0_i32_0 = arith.constant 0 : i32
    return %arg0, %arg1, %c0_i32 : i32, i32, i32
  }
  func.func @transform_1(%arg0: i32, %arg1: i32, %arg2: i32) -> (i32, i32) {
    %c0_i32 = arith.constant 0 : i32
    %c0_i32_0 = arith.constant 0 : i32
    return %c0_i32, %arg2 : i32, i32
  }
  func.func @transform_2(%arg0: i32, %arg1: i32, %arg2: i32) -> (i32, i32) {
    %c0_i32 = arith.constant 0 : i32
    %c0_i32_0 = arith.constant 0 : i32
    return %c0_i32, %arg2 : i32, i32
  }
  func.func @transform_3(%arg0: i32, %arg1: i32, %arg2: i32) -> (i32, i32) {
    %c0_i32 = arith.constant 0 : i32
    %c0_i32_0 = arith.constant 0 : i32
    return %c0_i32, %arg2 : i32, i32
  }
  func.func @transform_4(%arg0: i32, %arg1: i32, %arg2: i32) -> (i32, i32, i32) {
    %c0_i32 = arith.constant 0 : i32
    return %arg0, %arg1, %arg2 : i32, i32, i32
  }
}

</mosaic_0001>

<bundles_post_ra>
// kernel: tpu_custom_call.1
= control target key start
LH: loop header
LB: loop body
LE: loop exit
PB: predicated region body
PF: predicated region fallthrough
CT: control target
= control target key end

     0   :  { %9 = vsyncpa [#allocation3], 0  ;;  %s1880_s0 = inlined_call_operand.hbm [shape: bf16[2,256,128], index: 0, kind: input, shape index: {}]   ;;  %s1881_s1 = inlined_call_operand.hbm [shape: bf16[128,128], index: 1, kind: input, shape index: {}]   ;;  %s1882_s2 = inlined_call_operand.vmem [shape: f32[1,128], index: 2, kind: input, shape index: {}]   ;;  %s1883_s3 = inlined_call_operand.vmem [shape: f32[1,128], index: 3, kind: input, shape index: {}]   ;;  %s1884_s4 = inlined_call_operand.hbm [shape: f32[2,256,128], index: 4, kind: output, shape index: {}]  }
   0x1   :  { %11 = vsyncpa [#allocation3 + $0x1], 0 }
   0x2   :  { %12 = vsyncpa [#allocation6], 0 }
   0x3   :  { %13 = vsyncpa [#allocation4], 0 }
   0x4   :  { %15 = vsyncpa [#allocation4 + $0x1], 0  ;;  %s1477_s15 = smov 0   ;;  %s1479_s16 = smov 0  }
   0x5   :  { %s1481_s17 = smov 0   ;;  %s1483_s18 = smov 0  }
   0x6   :  { %s1485_s19 = smov 0   ;;  %s1487_s20 = smov 0  }
   0x7 LB: > { %s1063_s21 = sadd.s32 4294967295, %s1443_s20   ;;  %s1064_s22 = sadd.s32 4294967294, %s1443_s20   ;;  %s1443_s20 = sphi %s1487_s20, %s21_s20   ;;  %s1439_s19 = sphi %s1485_s19, %s1908_s19   ;;  %s1435_s18 = sphi %s1483_s18, %s1907_s18   ;;  %s1431_s17 = sphi %s1481_s17, %s1906_s17   ;;  %s1427_s16 = sphi %s1479_s16, %s1905_s16   ;;  %s1423_s15 = sphi %s1477_s15, %s1904_s15  }
   0x8   : > { %p62_p0 = scmp.ne.s32.totalorder %s1427_s16, %s1423_s15  ;;  %p1511_p1 = scmp.eq.s32.totalorder %s1063_s21, 0 }
   0x9   : > { %p1515_p2 = scmp.eq.s32.totalorder %s1063_s21, 1  ;;  %p174_p3 = scmp.eq.s32.totalorder %s1064_s22, 1 }
   0xa   : > { %s1889_s23 = scalar_select %p1511_p1, 1, 0 }
   0xb   : > { %s1890_s24 = scalar_select %p1515_p2, 1, 0 }
   0xc   : > { %p1521_p4 = por %p1511_p1, %p62_p0  ;;  %p1065_p5 = scmp.ge.s32.totalorder %s1443_s20, 1 }
   0xd   : > { %p1526_p6 = por %p174_p3, %p62_p0  ;;  %p181_p7 = scmp.lt.s32.totalorder %s1443_s20, 3 }
   0xe   : > { %s1891_s25 = scalar_select %p1521_p4, 1, 0 }
   0xf   : > { %s1892_s26 = scalar_select %p1526_p6, 1, 0 }
  0x10   : > { %p1531_p8 = pnand %p1065_p5, %p181_p7  ;;  %s1445_s28 = smov [#allocation5]  }
  0x11   : > { %s195_s29 = sshll.u32 %s1445_s28, 4  ;;  %s40_s5 = sadd.s32 1, %s1439_s19  ;;  %s196_s29 = int_to_ptr.vmem [resolvable:$true] %s195_s29 }
  0x12   : > { %s1893_s27 = scalar_select %p1531_p8, 1, 0 }
  0x13   : > { %p1206_p9 = pneg %p1531_p8  ;;  %s1299_s8 = scalar_lea.hbm %s1881_s1, 1024 }
  0x14   : > { %p1300_p12 = scmp.ne.s32.totalorder %s1881_s1, %s1299_s8  ;;  %p1306_p5 = scmp.lt.u32.totalorder %s1299_s8, %s1881_s1 }
  0x15   : > { %p1540_p11 = pnand %p1206_p9, %p1511_p1 }
  0x17   : > { %p1301_p13 = pneg %p1540_p11 }
  0x19   : > { %p1302_p0 = pnand %p1301_p13, %p1300_p12 }
  0x1b   : > { %p1303_p3 = pneg %p1302_p0 }
  0x1d   : > { %p1308_p7 = pnand %p1306_p5, %p1303_p3 }
  0x1f   : > { %1311 = shalt.err (!%p1308_p7)
}
  0x20   : > { %s1312_s13 = scalar_lea.vmem %s196_s29, 1024  ;;  %p1320_p1 = scmp.lt.s32.totalorder %s196_s29, %s196_s29 }
  0x21   : > { %p1313_p9 = scmp.ne.s32.totalorder %s196_s29, %s1312_s13  ;;  %p1321_p4 = scmp.lt.s32.totalorder %s1312_s13, %s1312_s13 }
  0x23   : > { %p1315_p10 = pnand %p1313_p9, %p1301_p13  ;;  %p1322_p8 = por %p1321_p4, %p1320_p1 }
  0x25   : > { %p1316_p6 = pneg %p1315_p10 }
  0x27   : > { %p1323_p2 = pnand %p1322_p8, %p1316_p6 }
  0x29   : > { %1326 = shalt.err (!%p1323_p2)
}
  0x2a   : > { %s1446_s14 = smov 64   ;;  %s1447_s21 = smov 4  }
  0x2b   : > { %1209 = dma.hbm_to_vmem [thread:$0]  (!%p1540_p11), %s1881_s1, 1024, %s196_s29, [#allocation6], %s1446_s14, %s1446_s14, %s1447_s21  }
  0x2c   : > { %p42_p1 = scmp.ge.s32.totalorder %s40_s5, 2  ;;  %s49_s6 = sadd.s32 1, %s1431_s17 }
  0x2d   : > { %p56_p2 = scmp.ne.s32.totalorder %s1431_s17, %s1427_s16  ;;  %p57_p4 = scmp.eq.s32.totalorder %s1443_s20, 0 }
  0x2e   : > { %s1910_s5 = smov (%p42_p1, %s40_s5), 0  ;;  %p1896_p8 = scmp.ne.s32.totalorder %s1890_s24, 0 }
  0x2f   : > { %p1570_p6 = por %p57_p4, %p56_p2  ;;  %s44_s8 = ssub.s32 %s1439_s19, %s1910_s5 }
  0x30   : > { %p1576_p10 = por %p1896_p8, %p56_p2  ;;  %p1219_p12 = scmp.lt.s32.totalorder %s1443_s20, 2 }
  0x31   : > { %p47_p11 = scmp.eq.s32.totalorder %s44_s8, 0  ;;  %s221_s29 = sand.u32 1, %s1431_s17  }
  0x32   : > { %s1070_s9 = sshll.u32 %s221_s29, 7  ;;  %s1108_s11 = sshll.u32 %s1439_s19, 11 }
  0x33   : > { %s1585_s10 = scalar_select %p47_p11, %s1431_s17, %s49_s6  }
  0x34   : > { %s1591_s22 = scalar_lea.hbm %s1880_s0, %s1108_s11  ;;  %s225_s24 = scalar_lea.vmem [#allocation2], %s1070_s9 }
  0x35   : > { %s234_s28 = sshll.u32 %s225_s24, 4  ;;  %p1597_p13 = pnand %p1219_p12, %p1570_p6  ;;  %s1593_s28 = int_to_ptr.vmem [resolvable:$true] %s234_s28 }
  0x36   : > { %s1601_s6 = scalar_lea.sflag [#allocation3], %s221_s29  ;;  %s1327_s12 = scalar_lea.hbm %s1591_s22, 2048 }
  0x37   : > { %p1328_p0 = scmp.ne.s32.totalorder %s1591_s22, %s1327_s12  ;;  %p1329_p3 = pneg %p1597_p13 }
  0x38   : > { %s1332_s7 = scalar_lea.hbm %s1880_s0, 4096  ;;  %p1333_p9 = scmp.lt.u32.totalorder %s1591_s22, %s1880_s0 }
  0x39   : > { %p1330_p5 = pnand %p1329_p3, %p1328_p0  ;;  %p1334_p1 = scmp.lt.u32.totalorder %s1332_s7, %s1327_s12 }
  0x3a   : > { %p1336_p4 = scmp.lt.u32.totalorder %s1327_s12, %s1591_s22 }
  0x3b   : > { %p1331_p7 = pneg %p1330_p5  ;;  %p1335_p2 = por %p1334_p1, %p1333_p9 }
  0x3d   : > { %p1337_p6 = por %p1336_p4, %p1335_p2 }
  0x3f   : > { %p1338_p8 = pnand %p1337_p6, %p1331_p7 }
  0x41   : > { %1341 = shalt.err (!%p1338_p8)
}
  0x42   : > { %s1342_s29 = scalar_lea.vmem %s1593_s28, 2048  ;;  %s1448_s9 = smov [#allocation2]  }
  0x43   : > { %p1343_p12 = scmp.ne.s32.totalorder %s1593_s28, %s1342_s29  ;;  %s1347_s11 = sshll.u32 %s1448_s9, 4  ;;  %s1348_s11 = int_to_ptr.vmem [resolvable:$false] %s1347_s11 }
  0x44   : > { %s1349_s13 = scalar_lea.vmem %s1348_s11, 4096  ;;  %p1350_p5 = scmp.lt.s32.totalorder %s1593_s28, %s1348_s11 }
  0x45   : > { %p1345_p11 = pnand %p1343_p12, %p1329_p3  ;;  %p1351_p9 = scmp.lt.s32.totalorder %s1349_s13, %s1342_s29 }
  0x47   : > { %p1346_p0 = pneg %p1345_p11  ;;  %p1352_p1 = por %p1351_p9, %p1350_p5 }
  0x49   : > { %p1353_p2 = pnand %p1352_p1, %p1346_p0 }
  0x4b   : > { %1356 = shalt.err (!%p1353_p2)
}
  0x4c   : > { %1213 = dma.hbm_to_vmem [thread:$0]  (!%p1597_p13), %s1591_s22, 2048, %s1593_s28, %s1601_s6, %s1446_s14, %s1446_s14, %s1447_s21  }
  0x4d   : > { %p1899_p3 = scmp.ne.s32.totalorder %s1893_s27, 0 }
  0x4e   : > { %s1635_s12 = sand.u32 (!%p1899_p3), 1, %s1427_s16   ;;  %p1900_p7 = scmp.ne.s32.totalorder (!%p1899_p3), %s1891_s25, 0 }
  0x4f   : > { %246 = sbr.rel (%p1899_p3) target bundleno = 412 (0x19c), region = 36  ;;  %s1074_s7 = sshll.u32 (!%p1899_p3), %s1635_s12, 7 }
  0x50   : > { %s249_s24 = scalar_lea.sflag (!%p1899_p3), [#allocation3], %s1635_s12  ;;  %s1639_s29 = scalar_lea.vmem (!%p1899_p3), [#allocation2], %s1074_s7 }
  0x56   : > { %1410 = dma.done.wait (%p1900_p7), %s249_s24, 2048  }
  0x57   : > { %1412 = vsyncadd (%p1900_p7), %s249_s24, 4294965248  ;;  %p1901_p13 = scmp.ne.s32.totalorder %s1889_s23, 0 }
  0x59   : > { %1414 = dma.done.wait (%p1901_p13), [#allocation6], 1024  }
  0x5a   : > { %1416 = vsyncadd (%p1901_p13), [#allocation6], 4294966272  ;;  %v1275_v0 = vld [vmem:[#allocation5] sm:$0xff]   ;;  %v1276_v1 = vld [vmem:[#allocation5 + $0x8] sm:$0xff]   ;;  %s1076_s21 = sshll.u32 %s1635_s12, 8  ;;  %s1109_s28 = sshll.u32 %s1435_s18, 12 }
  0x5b   : > { %1134 = vmatprep.subr.bf16.mxu0 %v1275_v0  ;;  %1182 = vmatprep.subr.bf16.mxu1 %v1275_v0  ;;  %v1277_v2 = vld [vmem:[#allocation5 + $0x10] sm:$0xff]   ;;  %v1278_v3 = vld [vmem:[#allocation5 + $0x18] sm:$0xff]   ;;  %v1283_v4 = vld [vmem:[%s1639_s29] sm:$0xff]   ;;  %s1694_s22 = scalar_lea.vmem [#allocation7], %s1076_s21  ;;  %s1823_s9 = scalar_lea.hbm %s1884_s4, %s1109_s28 }
  0x5c   : > { %1135 = vmatpush3.bf16.msra.mxu0 %v1275_v0  ;;  %1190 = vmatpush3.bf16.msra.mxu1 %v1275_v0  ;;  %v1284_v5 = vld [vmem:[%s1639_s29 + $0x40] sm:$0xff]   ;;  %v1280_v7 = vld [vmem:[#allocation5 + $0x28] sm:$0xff]   ;;  %v1281_v8 = vld [vmem:[#allocation5 + $0x30] sm:$0xff]   ;;  %s936_s8 = sshll.u32 %s1694_s22, 4  ;;  %s920_s11 = scalar_lea.sflag [#allocation4], %s1635_s12  ;;  %s1825_s8 = int_to_ptr.vmem [resolvable:$true] %s936_s8 }
  0x5d   : > { %1136 = vmatprep.subr.bf16.mxu0 %v1276_v1  ;;  %1183 = vmatprep.subr.bf16.mxu1 %v1276_v1  ;;  %v1279_v6 = vld [vmem:[#allocation5 + $0x20] sm:$0xff]   ;;  %v1282_v9 = vld [vmem:[#allocation5 + $0x38] sm:$0xff]   ;;  %v1285_v10 = vld [vmem:[%s1639_s29 + $0x8] sm:$0xff]   ;;  %s1357_s13 = scalar_lea.vmem %s1825_s8, 4096  ;;  %s1449_s7 = smov [#allocation7]  }
  0x5e   : > { %1150 = vmatprep.mubr.bf16.mxu0 %v1283_v4  ;;  %1166 = vmatprep.mubr.bf16.mxu1 %v1284_v5  ;;  %v1286_v11 = vld [vmem:[%s1639_s29 + $0x48] sm:$0xff]   ;;  %v1287_v12 = vld [vmem:[%s1639_s29 + $0x10] sm:$0xff]   ;;  %v1289_v14 = vld [vmem:[%s1639_s29 + $0x18] sm:$0xff]   ;;  %p1358_p4 = scmp.ne.s32.totalorder %s1825_s8, %s1357_s13  ;;  %s1361_s24 = sshll.u32 %s1449_s7, 4  ;;  %s1362_s24 = int_to_ptr.vmem [resolvable:$false] %s1361_s24 }
  0x5f   : > { %v1288_v13 = vld [vmem:[%s1639_s29 + $0x50] sm:$0xff]   ;;  %v1290_v15 = vld [vmem:[%s1639_s29 + $0x58] sm:$0xff]   ;;  %v1291_v16 = vld [vmem:[%s1639_s29 + $0x20] sm:$0xff]   ;;  %p1364_p12 = scmp.lt.s32.totalorder %s1825_s8, %s1362_s24 }
  0x60   : > { %1137 = vmatpush3.bf16.msra.mxu0 %v1276_v1  ;;  %1191 = vmatpush3.bf16.msra.mxu1 %v1276_v1  ;;  %v1292_v17 = vld [vmem:[%s1639_s29 + $0x60] sm:$0xff]   ;;  %v1293_v18 = vld [vmem:[%s1639_s29 + $0x28] sm:$0xff]   ;;  %v1295_v20 = vld [vmem:[%s1639_s29 + $0x30] sm:$0xff]   ;;  %p1359_p6 = pnand %p1358_p4, %p1576_p10 }
  0x61   : > { %1138 = vmatprep.subr.bf16.mxu0 %v1277_v2  ;;  %1184 = vmatprep.subr.bf16.mxu1 %v1277_v2  ;;  %v1294_v19 = vld [vmem:[%s1639_s29 + $0x68] sm:$0xff]   ;;  %v1296_v21 = vld [vmem:[%s1639_s29 + $0x70] sm:$0xff]   ;;  %v1297_v22 = vld [vmem:[%s1639_s29 + $0x38] sm:$0xff]  }
  0x62   : > { %v1298_v23 = vld [vmem:[%s1639_s29 + $0x78] sm:$0xff]   ;;  %v1668_v24 = vld [vmem:[%s1882_s2] ss:$0 sm:$0xff]  ;;  %p1360_p8 = pneg %p1359_p6  ;;  %s1363_s29 = scalar_lea.vmem %s1362_s24, 8192 }
  0x63   : > { %v1673_v26 = vld [vmem:[%s1883_s3] ss:$0 sm:$0xff]  ;;  %p1365_p11 = scmp.lt.s32.totalorder %s1363_s29, %s1357_s13 }
  0x64   : > { %1139 = vmatpush3.bf16.msra.mxu0 %v1277_v2  ;;  %1192 = vmatpush3.bf16.msra.mxu1 %v1277_v2 }
  0x65   : > { %1140 = vmatprep.subr.bf16.mxu0 %v1278_v3  ;;  %1185 = vmatprep.subr.bf16.mxu1 %v1278_v3  ;;  %p1366_p0 = por %p1365_p11, %p1364_p12 }
  0x67   : > { %p1367_p5 = pnand %p1366_p0, %p1360_p8 }
  0x68   : > { %1141 = vmatpush3.bf16.msra.mxu0 %v1278_v3  ;;  %1193 = vmatpush3.bf16.msra.mxu1 %v1278_v3 }
  0x69   : > { %1142 = vmatprep.subr.bf16.mxu0 %v1279_v6  ;;  %1186 = vmatprep.subr.bf16.mxu1 %v1279_v6 }
  0x6c   : > { %1143 = vmatpush3.bf16.msra.mxu0 %v1279_v6  ;;  %1194 = vmatpush3.bf16.msra.mxu1 %v1279_v6 }
  0x6d   : > { %1144 = vmatprep.subr.bf16.mxu0 %v1280_v7  ;;  %1187 = vmatprep.subr.bf16.mxu1 %v1280_v7 }
  0x70   : > { %1145 = vmatpush3.bf16.msra.mxu0 %v1280_v7  ;;  %1195 = vmatpush3.bf16.msra.mxu1 %v1280_v7 }
  0x71   : > { %1146 = vmatprep.subr.bf16.mxu0 %v1281_v8  ;;  %1188 = vmatprep.subr.bf16.mxu1 %v1281_v8 }
  0x74   : > { %1147 = vmatpush3.bf16.msra.mxu0 %v1281_v8  ;;  %1196 = vmatpush3.bf16.msra.mxu1 %v1281_v8 }
  0x75   : > { %1148 = vmatprep.subr.bf16.mxu0 %v1282_v9  ;;  %1189 = vmatprep.subr.bf16.mxu1 %v1282_v9 }
  0x78   : > { %1149 = vmatpush3.bf16.msra.mxu0 %v1282_v9  ;;  %1197 = vmatpush3.bf16.msra.mxu1 %v1282_v9 }
  0x7b   : > { %1151 = vmatmul.mubr.bf16.vlgmr.msra.gmra.mrb[0].mxu0 %v1285_v10  ;;  %1167 = vmatmul.mubr.bf16.vlgmr.msra.gmra.mrb[0].mxu1 %v1286_v11 }
  0x7c   : > { %1154 = vmatprep.mubr.bf16.mxu0 %v1287_v12  ;;  %1170 = vmatprep.mubr.bf16.mxu1 %v1288_v13 }
  0x83   : > { %1155 = vmatmul.mubr.bf16.gmra.mrb[4].mxu0 %v1289_v14  ;;  %1171 = vmatmul.mubr.bf16.gmra.mrb[4].mxu1 %v1290_v15 }
  0x84   : > { %1158 = vmatprep.mubr.bf16.mxu0 %v1291_v16  ;;  %1174 = vmatprep.mubr.bf16.mxu1 %v1292_v17 }
  0x8b   : > { %1159 = vmatmul.mubr.bf16.gmra.mrb[8].mxu0 %v1293_v18  ;;  %1175 = vmatmul.mubr.bf16.gmra.mrb[8].mxu1 %v1294_v19 }
  0x8c   : > { %1162 = vmatprep.mubr.bf16.mxu0 %v1295_v20  ;;  %1178 = vmatprep.mubr.bf16.mxu1 %v1296_v21 }
  0x93   : > { %1163 = vmatmul.mubr.bf16.gmra.mrb[12].mxu0 %v1297_v22  ;;  %1179 = vmatmul.mubr.bf16.gmra.mrb[12].mxu1 %v1298_v23 }
 0x14e   : > { %v1152_v25 = vpop.f32.mrb[0].mxu0  ;;  %v1168_v27 = vpop.f32.mrb[0].mxu1 }
 0x14f   : > { %v658_v28 = vmul.f32 %v1152_v25, %v1668_v24  ;;  %v674_v29 = vmul.f32 %v1168_v27, %v1668_v24  ;;  %v522_v30 = vpop.f32.mrb[1].mxu0  ;;  %v586_v31 = vpop.f32.mrb[1].mxu1 }
 0x150   : > { %v656_v32 = vmul.f32 %v1668_v24, %v522_v30  ;;  %v672_v33 = vmul.f32 %v1668_v24, %v586_v31  ;;  %v1153_v34 = vpop.f32.mrb[2].mxu0  ;;  %v1169_v35 = vpop.f32.mrb[2].mxu1 }
 0x151   : > { %v697_v36 = vadd.f32 %v1673_v26, %v658_v28  ;;  %v713_v37 = vadd.f32 %v1673_v26, %v674_v29  ;;  %v659_v38 = vmul.f32 %v1153_v34, %v1668_v24  ;;  %v675_v39 = vmul.f32 %v1169_v35, %v1668_v24  ;;  %v525_v40 = vpop.f32.mrb[3].mxu0  ;;  %v589_v41 = vpop.f32.mrb[3].mxu1 }
 0x152   : > { %v695_v42 = vadd.f32 %v1673_v26, %v656_v32  ;;  %v711_v43 = vadd.f32 %v1673_v26, %v672_v33  ;;  %v657_v44 = vmul.f32 %v1668_v24, %v525_v40  ;;  %v673_v45 = vmul.f32 %v1668_v24, %v589_v41 }
 0x153   : > { %v729_v46 = vadd.f32 3.0, %v697_v36  ;;  %v745_v47 = vadd.f32 3.0, %v713_v37  ;;  %v698_v48 = vadd.f32 %v1673_v26, %v659_v38  ;;  %v714_v49 = vadd.f32 %v1673_v26, %v675_v39 }
 0x154   : > { %v727_v50 = vadd.f32 3.0, %v695_v42  ;;  %v743_v51 = vadd.f32 3.0, %v711_v43  ;;  %v696_v52 = vadd.f32 %v1673_v26, %v657_v44  ;;  %v712_v53 = vadd.f32 %v1673_v26, %v673_v45 }
 0x155   : > { %v761_v54 = vmax.f32 %v729_v46, 0.0  ;;  %v777_v55 = vmax.f32 %v745_v47, 0.0  ;;  %v730_v56 = vadd.f32 3.0, %v698_v48  ;;  %v746_v57 = vadd.f32 3.0, %v714_v49 }
 0x156   : > { %v759_v58 = vmax.f32 %v727_v50, 0.0  ;;  %v775_v59 = vmax.f32 %v743_v51, 0.0  ;;  %v728_v60 = vadd.f32 3.0, %v696_v52  ;;  %v744_v61 = vadd.f32 3.0, %v712_v53  ;;  %v1156_v62 = vpop.f32.mrb[4].mxu0  ;;  %v1172_v63 = vpop.f32.mrb[4].mxu1 }
 0x157   : > { %v793_v0 = vmin.f32 %v761_v54, 6.0  ;;  %v809_v1 = vmin.f32 %v777_v55, 6.0  ;;  %v762_v2 = vmax.f32 %v730_v56, 0.0  ;;  %v778_v3 = vmax.f32 %v746_v57, 0.0  ;;  %v538_v4 = vpop.f32.mrb[5].mxu0  ;;  %v602_v5 = vpop.f32.mrb[5].mxu1 }
 0x158   : > { %v791_v6 = vmin.f32 %v759_v58, 6.0  ;;  %v807_v7 = vmin.f32 %v775_v59, 6.0  ;;  %v760_v8 = vmax.f32 %v728_v60, 0.0  ;;  %v776_v9 = vmax.f32 %v744_v61, 0.0  ;;  %v1157_v10 = vpop.f32.mrb[6].mxu0  ;;  %v1173_v11 = vpop.f32.mrb[6].mxu1 }
 0x159   : > { %v825_v12 = vmul.f32 0.16666667, %v793_v0  ;;  %v841_v13 = vmul.f32 0.16666667, %v809_v1  ;;  %v794_v14 = vmin.f32 %v762_v2, 6.0  ;;  %v810_v15 = vmin.f32 %v778_v3, 6.0 }
 0x15a   : > { %v823_v16 = vmul.f32 0.16666667, %v791_v6  ;;  %v839_v17 = vmul.f32 0.16666667, %v807_v7  ;;  %v792_v18 = vmin.f32 %v760_v8, 6.0  ;;  %v808_v19 = vmin.f32 %v776_v9, 6.0 }
 0x15b   : > { %v857_v20 = vmul.f32 %v825_v12, %v697_v36  ;;  %v873_v21 = vmul.f32 %v841_v13, %v713_v37  ;;  %v826_v22 = vmul.f32 0.16666667, %v794_v14  ;;  %v842_v23 = vmul.f32 0.16666667, %v810_v15  ;;  %v541_v25 = vpop.f32.mrb[7].mxu0  ;;  %v605_v27 = vpop.f32.mrb[7].mxu1 }
 0x15c   : > { %v855_v28 = vmul.f32 %v823_v16, %v695_v42  ;;  %v871_v29 = vmul.f32 %v839_v17, %v711_v43  ;;  %v824_v30 = vmul.f32 0.16666667, %v792_v18  ;;  %v840_v31 = vmul.f32 0.16666667, %v808_v19 }
 0x15d   : > { %889 = vst [vmem:[%s1694_s22 + $0x10] sm:$0xff] %v857_v20  ;;  %905 = vst [vmem:[%s1694_s22 + $0x90] sm:$0xff] %v873_v21  ;;  %v858_v32 = vmul.f32 %v826_v22, %v698_v48  ;;  %v874_v33 = vmul.f32 %v842_v23, %v714_v49  ;;  %v662_v34 = vmul.f32 %v1156_v62, %v1668_v24 }
 0x15e   : > { %v678_v35 = vmul.f32 %v1172_v63, %v1668_v24  ;;  %887 = vst [vmem:[%s1694_s22] sm:$0xff] %v855_v28  ;;  %903 = vst [vmem:[%s1694_s22 + $0x80] sm:$0xff] %v871_v29  ;;  %v856_v36 = vmul.f32 %v824_v30, %v696_v52  ;;  %v872_v37 = vmul.f32 %v840_v31, %v712_v53  ;;  %v1704_v40 = vpop.f32.mrb[8].mxu0  ;;  %v1706_v41 = vpop.f32.mrb[8].mxu1 }
 0x15f   : > { %v660_v38 = vmul.f32 %v1668_v24, %v538_v4  ;;  %v676_v39 = vmul.f32 %v1668_v24, %v602_v5  ;;  %890 = vst [vmem:[%s1694_s22 + $0x18] sm:$0xff] %v858_v32  ;;  %906 = vst [vmem:[%s1694_s22 + $0x98] sm:$0xff] %v874_v33  ;;  %v701_v42 = vadd.f32 %v1673_v26, %v662_v34  ;;  %v1714_v46 = vpop.f32.mrb[9].mxu0  ;;  %v1716_v47 = vpop.f32.mrb[9].mxu1 }
 0x160   : > { %v717_v43 = vadd.f32 %v1673_v26, %v678_v35  ;;  %v663_v44 = vmul.f32 %v1157_v10, %v1668_v24  ;;  %v679_v45 = vmul.f32 %v1173_v11, %v1668_v24  ;;  %888 = vst [vmem:[%s1694_s22 + $0x8] sm:$0xff] %v856_v36  ;;  %904 = vst [vmem:[%s1694_s22 + $0x88] sm:$0xff] %v872_v37  ;;  %v1724_v52 = vpop.f32.mrb[10].mxu0  ;;  %v1726_v53 = vpop.f32.mrb[10].mxu1 }
 0x161   : > { %v699_v48 = vadd.f32 %v1673_v26, %v660_v38  ;;  %v715_v49 = vadd.f32 %v1673_v26, %v676_v39  ;;  %v661_v50 = vmul.f32 %v1668_v24, %v541_v25  ;;  %v677_v51 = vmul.f32 %v1668_v24, %v605_v27  ;;  %v1730_v58 = vpop.f32.mrb[11].mxu0  ;;  %v1732_v59 = vpop.f32.mrb[11].mxu1 }
 0x162   : > { %v733_v54 = vadd.f32 3.0, %v701_v42  ;;  %v749_v55 = vadd.f32 3.0, %v717_v43  ;;  %v702_v56 = vadd.f32 %v1673_v26, %v663_v44  ;;  %v718_v57 = vadd.f32 %v1673_v26, %v679_v45 }
 0x163   : > { %v731_v60 = vadd.f32 3.0, %v699_v48  ;;  %v747_v61 = vadd.f32 3.0, %v715_v49  ;;  %v700_v62 = vadd.f32 %v1673_v26, %v661_v50  ;;  %v716_v63 = vadd.f32 %v1673_v26, %v677_v51 }
 0x164   : > { %v765_v0 = vmax.f32 %v733_v54, 0.0  ;;  %v781_v1 = vmax.f32 %v749_v55, 0.0  ;;  %v734_v2 = vadd.f32 3.0, %v702_v56  ;;  %v750_v3 = vadd.f32 3.0, %v718_v57 }
 0x165   : > { %v763_v4 = vmax.f32 %v731_v60, 0.0  ;;  %v779_v5 = vmax.f32 %v747_v61, 0.0  ;;  %v732_v6 = vadd.f32 3.0, %v700_v62  ;;  %v748_v7 = vadd.f32 3.0, %v716_v63 }
 0x166   : > { %v797_v8 = vmin.f32 %v765_v0, 6.0  ;;  %v813_v9 = vmin.f32 %v781_v1, 6.0  ;;  %v766_v10 = vmax.f32 %v734_v2, 0.0  ;;  %v782_v11 = vmax.f32 %v750_v3, 0.0  ;;  %v1736_v16 = vpop.f32.mrb[12].mxu0  ;;  %v1738_v17 = vpop.f32.mrb[12].mxu1 }
 0x167   : > { %v795_v12 = vmin.f32 %v763_v4, 6.0  ;;  %v811_v13 = vmin.f32 %v779_v5, 6.0  ;;  %v764_v14 = vmax.f32 %v732_v6, 0.0  ;;  %v780_v15 = vmax.f32 %v748_v7, 0.0  ;;  %v1740_v32 = vpop.f32.mrb[13].mxu0  ;;  %v1742_v33 = vpop.f32.mrb[13].mxu1 }
 0x168   : > { %v829_v18 = vmul.f32 0.16666667, %v797_v8  ;;  %v845_v19 = vmul.f32 0.16666667, %v813_v9  ;;  %v798_v20 = vmin.f32 %v766_v10, 6.0  ;;  %v814_v21 = vmin.f32 %v782_v11, 6.0 }
 0x169   : > { %v827_v22 = vmul.f32 0.16666667, %v795_v12  ;;  %v843_v23 = vmul.f32 0.16666667, %v811_v13  ;;  %v796_v25 = vmin.f32 %v764_v14, 6.0  ;;  %v812_v27 = vmin.f32 %v780_v15, 6.0 }
 0x16a   : > { %v861_v28 = vmul.f32 %v829_v18, %v701_v42  ;;  %v877_v29 = vmul.f32 %v845_v19, %v717_v43  ;;  %v830_v30 = vmul.f32 0.16666667, %v798_v20  ;;  %v846_v31 = vmul.f32 0.16666667, %v814_v21  ;;  %v1744_v38 = vpop.f32.mrb[14].mxu0  ;;  %v1746_v39 = vpop.f32.mrb[14].mxu1 }
 0x16b   : > { %v859_v34 = vmul.f32 %v827_v22, %v699_v48  ;;  %v875_v35 = vmul.f32 %v843_v23, %v715_v49  ;;  %v828_v36 = vmul.f32 0.16666667, %v796_v25  ;;  %v844_v37 = vmul.f32 0.16666667, %v812_v27  ;;  %v1754_v48 = vpop.f32.mrb[15].mxu0  ;;  %v1756_v49 = vpop.f32.mrb[15].mxu1 }
 0x16c   : > { %893 = vst [vmem:[%s1694_s22 + $0x30] sm:$0xff] %v861_v28  ;;  %909 = vst [vmem:[%s1694_s22 + $0xb0] sm:$0xff] %v877_v29  ;;  %v862_v42 = vmul.f32 %v830_v30, %v702_v56  ;;  %v878_v43 = vmul.f32 %v846_v31, %v718_v57  ;;  %v666_v44 = vmul.f32 %v1704_v40, %v1668_v24 }
 0x16d   : > { %v682_v45 = vmul.f32 %v1706_v41, %v1668_v24  ;;  %891 = vst [vmem:[%s1694_s22 + $0x20] sm:$0xff] %v859_v34  ;;  %907 = vst [vmem:[%s1694_s22 + $0xa0] sm:$0xff] %v875_v35  ;;  %v860_v50 = vmul.f32 %v828_v36, %v700_v62  ;;  %v876_v51 = vmul.f32 %v844_v37, %v716_v63 }
 0x16e   : > { %v664_v54 = vmul.f32 %v1668_v24, %v1714_v46  ;;  %v680_v55 = vmul.f32 %v1668_v24, %v1716_v47  ;;  %894 = vst [vmem:[%s1694_s22 + $0x38] sm:$0xff] %v862_v42  ;;  %910 = vst [vmem:[%s1694_s22 + $0xb8] sm:$0xff] %v878_v43  ;;  %v705_v40 = vadd.f32 %v1673_v26, %v666_v44 }
 0x16f   : > { %v721_v41 = vadd.f32 %v1673_v26, %v682_v45  ;;  %v667_v56 = vmul.f32 %v1724_v52, %v1668_v24  ;;  %v683_v57 = vmul.f32 %v1726_v53, %v1668_v24  ;;  %892 = vst [vmem:[%s1694_s22 + $0x28] sm:$0xff] %v860_v50  ;;  %908 = vst [vmem:[%s1694_s22 + $0xa8] sm:$0xff] %v876_v51 }
 0x170   : > { %v703_v60 = vadd.f32 %v1673_v26, %v664_v54  ;;  %v719_v46 = vadd.f32 %v1673_v26, %v680_v55  ;;  %v665_v47 = vmul.f32 %v1668_v24, %v1730_v58  ;;  %v681_v61 = vmul.f32 %v1668_v24, %v1732_v59 }
 0x171   : > { %v737_v62 = vadd.f32 3.0, %v705_v40  ;;  %v753_v63 = vadd.f32 3.0, %v721_v41  ;;  %v706_v0 = vadd.f32 %v1673_v26, %v667_v56  ;;  %v722_v52 = vadd.f32 %v1673_v26, %v683_v57 }
 0x172   : > { %v735_v1 = vadd.f32 3.0, %v703_v60  ;;  %v751_v53 = vadd.f32 3.0, %v719_v46  ;;  %v704_v2 = vadd.f32 %v1673_v26, %v665_v47  ;;  %v720_v3 = vadd.f32 %v1673_v26, %v681_v61 }
 0x173   : > { %v769_v4 = vmax.f32 %v737_v62, 0.0  ;;  %v785_v5 = vmax.f32 %v753_v63, 0.0  ;;  %v738_v6 = vadd.f32 3.0, %v706_v0  ;;  %v754_v7 = vadd.f32 3.0, %v722_v52 }
 0x174   : > { %v767_v58 = vmax.f32 %v735_v1, 0.0  ;;  %v783_v8 = vmax.f32 %v751_v53, 0.0  ;;  %v736_v9 = vadd.f32 3.0, %v704_v2  ;;  %v752_v59 = vadd.f32 3.0, %v720_v3 }
 0x175   : > { %v801_v10 = vmin.f32 %v769_v4, 6.0  ;;  %v817_v11 = vmin.f32 %v785_v5, 6.0  ;;  %v770_v12 = vmax.f32 %v738_v6, 0.0  ;;  %v786_v13 = vmax.f32 %v754_v7, 0.0 }
 0x176   : > { %v799_v14 = vmin.f32 %v767_v58, 6.0  ;;  %v815_v15 = vmin.f32 %v783_v8, 6.0  ;;  %v768_v18 = vmax.f32 %v736_v9, 0.0  ;;  %v784_v19 = vmax.f32 %v752_v59, 0.0 }
 0x177   : > { %v833_v20 = vmul.f32 0.16666667, %v801_v10  ;;  %v849_v21 = vmul.f32 0.16666667, %v817_v11  ;;  %v802_v22 = vmin.f32 %v770_v12, 6.0  ;;  %v818_v23 = vmin.f32 %v786_v13, 6.0 }
 0x178   : > { %v831_v25 = vmul.f32 0.16666667, %v799_v14  ;;  %v847_v27 = vmul.f32 0.16666667, %v815_v15  ;;  %v800_v28 = vmin.f32 %v768_v18, 6.0  ;;  %v816_v29 = vmin.f32 %v784_v19, 6.0 }
 0x179   : > { %v865_v30 = vmul.f32 %v833_v20, %v705_v40  ;;  %v881_v31 = vmul.f32 %v849_v21, %v721_v41  ;;  %v834_v34 = vmul.f32 0.16666667, %v802_v22  ;;  %v850_v35 = vmul.f32 0.16666667, %v818_v23 }
 0x17a   : > { %v863_v36 = vmul.f32 %v831_v25, %v703_v60  ;;  %v879_v37 = vmul.f32 %v847_v27, %v719_v46  ;;  %v832_v42 = vmul.f32 0.16666667, %v800_v28  ;;  %v848_v43 = vmul.f32 0.16666667, %v816_v29 }
 0x17b   : > { %897 = vst [vmem:[%s1694_s22 + $0x50] sm:$0xff] %v865_v30  ;;  %913 = vst [vmem:[%s1694_s22 + $0xd0] sm:$0xff] %v881_v31  ;;  %v866_v44 = vmul.f32 %v834_v34, %v706_v0  ;;  %v882_v45 = vmul.f32 %v850_v35, %v722_v52  ;;  %v670_v50 = vmul.f32 %v1736_v16, %v1668_v24 }
 0x17c   : > { %v686_v51 = vmul.f32 %v1738_v17, %v1668_v24  ;;  %895 = vst [vmem:[%s1694_s22 + $0x40] sm:$0xff] %v863_v36  ;;  %911 = vst [vmem:[%s1694_s22 + $0xc0] sm:$0xff] %v879_v37  ;;  %v864_v54 = vmul.f32 %v832_v42, %v704_v2  ;;  %v880_v55 = vmul.f32 %v848_v43, %v720_v3 }
 0x17d   : > { %v668_v40 = vmul.f32 %v1668_v24, %v1740_v32  ;;  %v684_v41 = vmul.f32 %v1668_v24, %v1742_v33  ;;  %898 = vst [vmem:[%s1694_s22 + $0x58] sm:$0xff] %v866_v44  ;;  %914 = vst [vmem:[%s1694_s22 + $0xd8] sm:$0xff] %v882_v45  ;;  %v709_v56 = vadd.f32 %v1673_v26, %v670_v50 }
 0x17e   : > { %v725_v57 = vadd.f32 %v1673_v26, %v686_v51  ;;  %v671_v16 = vmul.f32 %v1744_v38, %v1668_v24  ;;  %v687_v17 = vmul.f32 %v1746_v39, %v1668_v24  ;;  %896 = vst [vmem:[%s1694_s22 + $0x48] sm:$0xff] %v864_v54  ;;  %912 = vst [vmem:[%s1694_s22 + $0xc8] sm:$0xff] %v880_v55 }
 0x17f   : > { %v707_v60 = vadd.f32 %v1673_v26, %v668_v40  ;;  %v723_v32 = vadd.f32 %v1673_v26, %v684_v41  ;;  %v669_v33 = vmul.f32 %v1668_v24, %v1754_v48  ;;  %v685_v46 = vmul.f32 %v1668_v24, %v1756_v49 }
 0x180   : > { %v741_v47 = vadd.f32 3.0, %v709_v56  ;;  %v757_v61 = vadd.f32 3.0, %v725_v57  ;;  %v710_v62 = vadd.f32 %v1673_v26, %v671_v16  ;;  %v726_v38 = vadd.f32 %v1673_v26, %v687_v17 }
 0x181   : > { %v739_v63 = vadd.f32 3.0, %v707_v60  ;;  %v755_v39 = vadd.f32 3.0, %v723_v32  ;;  %v708_v0 = vadd.f32 %v1673_v26, %v669_v33  ;;  %v724_v52 = vadd.f32 %v1673_v26, %v685_v46 }
 0x182   : > { %v773_v1 = vmax.f32 %v741_v47, 0.0  ;;  %v789_v53 = vmax.f32 %v757_v61, 0.0  ;;  %v742_v48 = vadd.f32 3.0, %v710_v62  ;;  %v758_v2 = vadd.f32 3.0, %v726_v38 }
 0x183   : > { %v771_v3 = vmax.f32 %v739_v63, 0.0  ;;  %v787_v24 = vmax.f32 %v755_v39, 0.0  ;;  %v740_v49 = vadd.f32 3.0, %v708_v0  ;;  %v756_v4 = vadd.f32 3.0, %v724_v52 }
 0x184   : > { %v805_v5 = vmin.f32 %v773_v1, 6.0  ;;  %v821_v6 = vmin.f32 %v789_v53, 6.0  ;;  %v774_v7 = vmax.f32 %v742_v48, 0.0  ;;  %v790_v58 = vmax.f32 %v758_v2, 0.0 }
 0x185   : > { %v803_v8 = vmin.f32 %v771_v3, 6.0  ;;  %v819_v9 = vmin.f32 %v787_v24, 6.0  ;;  %v772_v59 = vmax.f32 %v740_v49, 0.0  ;;  %v788_v10 = vmax.f32 %v756_v4, 0.0 }
 0x186   : > { %v837_v26 = vmul.f32 0.16666667, %v805_v5  ;;  %v853_v11 = vmul.f32 0.16666667, %v821_v6  ;;  %v806_v12 = vmin.f32 %v774_v7, 6.0  ;;  %v822_v13 = vmin.f32 %v790_v58, 6.0 }
 0x187   : > { %v835_v14 = vmul.f32 0.16666667, %v803_v8  ;;  %v851_v15 = vmul.f32 0.16666667, %v819_v9  ;;  %v804_v18 = vmin.f32 %v772_v59, 6.0  ;;  %v820_v19 = vmin.f32 %v788_v10, 6.0 }
 0x188   : > { %v869_v20 = vmul.f32 %v837_v26, %v709_v56  ;;  %v885_v21 = vmul.f32 %v853_v11, %v725_v57  ;;  %v838_v22 = vmul.f32 0.16666667, %v806_v12  ;;  %v854_v23 = vmul.f32 0.16666667, %v822_v13 }
 0x189   : > { %v867_v25 = vmul.f32 %v835_v14, %v707_v60  ;;  %v883_v27 = vmul.f32 %v851_v15, %v723_v32  ;;  %v836_v28 = vmul.f32 0.16666667, %v804_v18  ;;  %v852_v29 = vmul.f32 0.16666667, %v820_v19 }
 0x18a   : > { %901 = vst [vmem:[%s1694_s22 + $0x70] sm:$0xff] %v869_v20  ;;  %917 = vst [vmem:[%s1694_s22 + $0xf0] sm:$0xff] %v885_v21  ;;  %v870_v30 = vmul.f32 %v838_v22, %v710_v62  ;;  %v886_v31 = vmul.f32 %v854_v23, %v726_v38 }
 0x18b   : > { %899 = vst [vmem:[%s1694_s22 + $0x60] sm:$0xff] %v867_v25  ;;  %915 = vst [vmem:[%s1694_s22 + $0xe0] sm:$0xff] %v883_v27  ;;  %v868_v34 = vmul.f32 %v836_v28, %v708_v0  ;;  %v884_v35 = vmul.f32 %v852_v29, %v724_v52 }
 0x18c   : > { %902 = vst [vmem:[%s1694_s22 + $0x78] sm:$0xff] %v870_v30  ;;  %918 = vst [vmem:[%s1694_s22 + $0xf8] sm:$0xff] %v886_v31 }
 0x18d   : > { %900 = vst [vmem:[%s1694_s22 + $0x68] sm:$0xff] %v868_v34  ;;  %916 = vst [vmem:[%s1694_s22 + $0xe8] sm:$0xff] %v884_v35 }
 0x18e   : > { %1370 = shalt.err (!%p1367_p5)
}
 0x18f   : > { %s1371_s23 = scalar_lea.hbm %s1823_s9, 4096  ;;  %s1375_s14 = scalar_lea.hbm %s1884_s4, 8192 }
 0x190   : > { %p1372_p9 = scmp.ne.s32.totalorder %s1823_s9, %s1371_s23  ;;  %p1376_p3 = scmp.lt.u32.totalorder %s1823_s9, %s1884_s4 }
 0x191   : > { %p1377_p7 = scmp.lt.u32.totalorder %s1375_s14, %s1371_s23  ;;  %p1379_p4 = scmp.lt.u32.totalorder %s1371_s23, %s1823_s9 }
 0x192   : > { %p1373_p1 = pnand %p1372_p9, %p1576_p10 }
 0x193   : > { %p1378_p13 = por %p1377_p7, %p1376_p3 }
 0x194   : > { %p1374_p2 = pneg %p1373_p1 }
 0x195   : > { %p1380_p6 = por %p1379_p4, %p1378_p13 }
 0x197   : > { %p1381_p8 = pnand %p1380_p6, %p1374_p2 }
 0x199   : > { %1384 = shalt.err (!%p1381_p8)
}
 0x19a   : > { %s1450_s28 = smov 128   ;;  %s1451_s18 = smov 8  }
 0x19b   : > { %1204 = dma.vmem_to_hbm [thread:$0]  (%p1576_p10), %s1825_s8, 4096, %s1823_s9, %s920_s11, %s1450_s28, %s1450_s28, %s1451_s18  }
 0x19c PF: > { %s951_s6 = sand.u32 1, %s1423_s15   ;;  %p1902_p12 = scmp.ne.s32.totalorder %s1892_s26, 0 }
 0x19d   : > { %p1903_p11 = scmp.ge.s32.totalorder %s1443_s20, 2  ;;  %s952_s13 = scalar_lea.sflag [#allocation4], %s951_s6 }
 0x19f   : > { %p1215_p0 = pnand %p1903_p11, %p1902_p12 }
 0x1a1   : > { %1418 = dma.done.wait (!%p1215_p0), %s952_s13, 4096  }
 0x1a2   : > { %1420 = vsyncadd (!%p1215_p0), %s952_s13, 4294963200  ;;  %s21_s20 = sadd.s32 1, %s1443_s20   ;;  %s1904_s15 = smov %s1427_s16 }
 0x1a3   : > { %p18_p5 = scmp.ge.s32.totalorder %s21_s20, 4   ;;  %s1905_s16 = smov %s1431_s17 }
 0x1a4   : > { %s1906_s17 = smov %s1585_s10  ;;  %s1907_s18 = smov %s1439_s19 }
 0x1a5   : > { %s1908_s19 = smov %s1910_s5  ;;  %20 = sbr.rel (!%p18_p5) target bundleno = 7 (0x7), region = 92 }
 0x1ac   :  { %957 = vsyncpa [#allocation3], 1 }
 0x1ad   :  { %959 = vsyncpa [#allocation3 + $0x1], 1 }
 0x1ae   :  { %960 = vsyncpa [#allocation6], 1 }
 0x1af   :  { %961 = vsyncpa [#allocation4], 1 }
 0x1b0   :  { %963 = vsyncpa [#allocation4 + $0x1], 1 }

// kernel: tpu_custom_call.1
= control target key start
LH: loop header
LB: loop body
LE: loop exit
PB: predicated region body
PF: predicated region fallthrough
CT: control target
= control target key end

     0   :  { %9 = vsyncpa [#allocation3], 0  ;;  %s1880_s0 = inlined_call_operand.hbm [shape: bf16[2,256,128], index: 0, kind: input, shape index: {}]   ;;  %s1881_s1 = inlined_call_operand.hbm [shape: bf16[128,128], index: 1, kind: input, shape index: {}]   ;;  %s1882_s2 = inlined_call_operand.vmem [shape: f32[1,128], index: 2, kind: input, shape index: {}]   ;;  %s1883_s3 = inlined_call_operand.vmem [shape: f32[1,128], index: 3, kind: input, shape index: {}]   ;;  %s1884_s4 = inlined_call_operand.hbm [shape: f32[2,256,128], index: 4, kind: output, shape index: {}]  }
   0x1   :  { %11 = vsyncpa [#allocation3 + $0x1], 0 }
   0x2   :  { %12 = vsyncpa [#allocation6], 0 }
   0x3   :  { %13 = vsyncpa [#allocation4], 0 }
   0x4   :  { %15 = vsyncpa [#allocation4 + $0x1], 0  ;;  %s1477_s15 = smov 0   ;;  %s1479_s16 = smov 0  }
   0x5   :  { %s1481_s17 = smov 0   ;;  %s1483_s18 = smov 0  }
   0x6   :  { %s1485_s19 = smov 0   ;;  %s1487_s20 = smov 0  }
   0x7 LB: > { %s1063_s21 = sadd.s32 4294967295, %s1443_s20   ;;  %s1064_s22 = sadd.s32 4294967294, %s1443_s20   ;;  %s1443_s20 = sphi %s1487_s20, %s21_s20   ;;  %s1439_s19 = sphi %s1485_s19, %s1908_s19   ;;  %s1435_s18 = sphi %s1483_s18, %s1907_s18   ;;  %s1431_s17 = sphi %s1481_s17, %s1906_s17   ;;  %s1427_s16 = sphi %s1479_s16, %s1905_s16   ;;  %s1423_s15 = sphi %s1477_s15, %s1904_s15  }
   0x8   : > { %p62_p0 = scmp.ne.s32.totalorder %s1427_s16, %s1423_s15  ;;  %p1511_p1 = scmp.eq.s32.totalorder %s1063_s21, 0 }
   0x9   : > { %p1515_p2 = scmp.eq.s32.totalorder %s1063_s21, 1  ;;  %p174_p3 = scmp.eq.s32.totalorder %s1064_s22, 1 }
   0xa   : > { %s1889_s23 = scalar_select %p1511_p1, 1, 0 }
   0xb   : > { %s1890_s24 = scalar_select %p1515_p2, 1, 0 }
   0xc   : > { %p1521_p4 = por %p1511_p1, %p62_p0  ;;  %p1065_p5 = scmp.ge.s32.totalorder %s1443_s20, 1 }
   0xd   : > { %p1526_p6 = por %p174_p3, %p62_p0  ;;  %p181_p7 = scmp.lt.s32.totalorder %s1443_s20, 3 }
   0xe   : > { %s1891_s25 = scalar_select %p1521_p4, 1, 0 }
   0xf   : > { %s1892_s26 = scalar_select %p1526_p6, 1, 0 }
  0x10   : > { %p1531_p8 = pnand %p1065_p5, %p181_p7  ;;  %s1445_s28 = smov [#allocation5]  }
  0x11   : > { %s195_s29 = sshll.u32 %s1445_s28, 4  ;;  %s40_s5 = sadd.s32 1, %s1439_s19  ;;  %s196_s29 = int_to_ptr.vmem [resolvable:$true] %s195_s29 }
  0x12   : > { %s1893_s27 = scalar_select %p1531_p8, 1, 0 }
  0x13   : > { %p1206_p9 = pneg %p1531_p8  ;;  %s1299_s8 = scalar_lea.hbm %s1881_s1, 1024 }
  0x14   : > { %p1300_p12 = scmp.ne.s32.totalorder %s1881_s1, %s1299_s8  ;;  %p1306_p5 = scmp.lt.u32.totalorder %s1299_s8, %s1881_s1 }
  0x15   : > { %p1540_p11 = pnand %p1206_p9, %p1511_p1 }
  0x17   : > { %p1301_p13 = pneg %p1540_p11 }
  0x19   : > { %p1302_p0 = pnand %p1301_p13, %p1300_p12 }
  0x1b   : > { %p1303_p3 = pneg %p1302_p0 }
  0x1d   : > { %p1308_p7 = pnand %p1306_p5, %p1303_p3 }
  0x1f   : > { %1311 = shalt.err (!%p1308_p7)
}
  0x20   : > { %s1312_s13 = scalar_lea.vmem %s196_s29, 1024  ;;  %p1320_p1 = scmp.lt.s32.totalorder %s196_s29, %s196_s29 }
  0x21   : > { %p1313_p9 = scmp.ne.s32.totalorder %s196_s29, %s1312_s13  ;;  %p1321_p4 = scmp.lt.s32.totalorder %s1312_s13, %s1312_s13 }
  0x23   : > { %p1315_p10 = pnand %p1313_p9, %p1301_p13  ;;  %p1322_p8 = por %p1321_p4, %p1320_p1 }
  0x25   : > { %p1316_p6 = pneg %p1315_p10 }
  0x27   : > { %p1323_p2 = pnand %p1322_p8, %p1316_p6 }
  0x29   : > { %1326 = shalt.err (!%p1323_p2)
}
  0x2a   : > { %s1446_s14 = smov 64   ;;  %s1447_s21 = smov 4  }
  0x2b   : > { %1209 = dma.hbm_to_vmem [thread:$0]  (!%p1540_p11), %s1881_s1, 1024, %s196_s29, [#allocation6], %s1446_s14, %s1446_s14, %s1447_s21  }
  0x2c   : > { %p42_p1 = scmp.ge.s32.totalorder %s40_s5, 2  ;;  %s49_s6 = sadd.s32 1, %s1431_s17 }
  0x2d   : > { %p56_p2 = scmp.ne.s32.totalorder %s1431_s17, %s1427_s16  ;;  %p57_p4 = scmp.eq.s32.totalorder %s1443_s20, 0 }
  0x2e   : > { %s1910_s5 = smov (%p42_p1, %s40_s5), 0  ;;  %p1896_p8 = scmp.ne.s32.totalorder %s1890_s24, 0 }
  0x2f   : > { %p1570_p6 = por %p57_p4, %p56_p2  ;;  %s44_s8 = ssub.s32 %s1439_s19, %s1910_s5 }
  0x30   : > { %p1576_p10 = por %p1896_p8, %p56_p2  ;;  %p1219_p12 = scmp.lt.s32.totalorder %s1443_s20, 2 }
  0x31   : > { %p47_p11 = scmp.eq.s32.totalorder %s44_s8, 0  ;;  %s221_s29 = sand.u32 1, %s1431_s17  }
  0x32   : > { %s1070_s9 = sshll.u32 %s221_s29, 7  ;;  %s1108_s11 = sshll.u32 %s1439_s19, 11 }
  0x33   : > { %s1585_s10 = scalar_select %p47_p11, %s1431_s17, %s49_s6  }
  0x34   : > { %s1591_s22 = scalar_lea.hbm %s1880_s0, %s1108_s11  ;;  %s225_s24 = scalar_lea.vmem [#allocation2], %s1070_s9 }
  0x35   : > { %s234_s28 = sshll.u32 %s225_s24, 4  ;;  %p1597_p13 = pnand %p1219_p12, %p1570_p6  ;;  %s1593_s28 = int_to_ptr.vmem [resolvable:$true] %s234_s28 }
  0x36   : > { %s1601_s6 = scalar_lea.sflag [#allocation3], %s221_s29  ;;  %s1327_s12 = scalar_lea.hbm %s1591_s22, 2048 }
  0x37   : > { %p1328_p0 = scmp.ne.s32.totalorder %s1591_s22, %s1327_s12  ;;  %p1329_p3 = pneg %p1597_p13 }
  0x38   : > { %s1332_s7 = scalar_lea.hbm %s1880_s0, 4096  ;;  %p1333_p9 = scmp.lt.u32.totalorder %s1591_s22, %s1880_s0 }
  0x39   : > { %p1330_p5 = pnand %p1329_p3, %p1328_p0  ;;  %p1334_p1 = scmp.lt.u32.totalorder %s1332_s7, %s1327_s12 }
  0x3a   : > { %p1336_p4 = scmp.lt.u32.totalorder %s1327_s12, %s1591_s22 }
  0x3b   : > { %p1331_p7 = pneg %p1330_p5  ;;  %p1335_p2 = por %p1334_p1, %p1333_p9 }
  0x3d   : > { %p1337_p6 = por %p1336_p4, %p1335_p2 }
  0x3f   : > { %p1338_p8 = pnand %p1337_p6, %p1331_p7 }
  0x41   : > { %1341 = shalt.err (!%p1338_p8)
}
  0x42   : > { %s1342_s29 = scalar_lea.vmem %s1593_s28, 2048  ;;  %s1448_s9 = smov [#allocation2]  }
  0x43   : > { %p1343_p12 = scmp.ne.s32.totalorder %s1593_s28, %s1342_s29  ;;  %s1347_s11 = sshll.u32 %s1448_s9, 4  ;;  %s1348_s11 = int_to_ptr.vmem [resolvable:$false] %s1347_s11 }
  0x44   : > { %s1349_s13 = scalar_lea.vmem %s1348_s11, 4096  ;;  %p1350_p5 = scmp.lt.s32.totalorder %s1593_s28, %s1348_s11 }
  0x45   : > { %p1345_p11 = pnand %p1343_p12, %p1329_p3  ;;  %p1351_p9 = scmp.lt.s32.totalorder %s1349_s13, %s1342_s29 }
  0x47   : > { %p1346_p0 = pneg %p1345_p11  ;;  %p1352_p1 = por %p1351_p9, %p1350_p5 }
  0x49   : > { %p1353_p2 = pnand %p1352_p1, %p1346_p0 }
  0x4b   : > { %1356 = shalt.err (!%p1353_p2)
}
  0x4c   : > { %1213 = dma.hbm_to_vmem [thread:$0]  (!%p1597_p13), %s1591_s22, 2048, %s1593_s28, %s1601_s6, %s1446_s14, %s1446_s14, %s1447_s21  }
  0x4d   : > { %p1899_p3 = scmp.ne.s32.totalorder %s1893_s27, 0 }
  0x4e   : > { %s1635_s12 = sand.u32 (!%p1899_p3), 1, %s1427_s16   ;;  %p1900_p7 = scmp.ne.s32.totalorder (!%p1899_p3), %s1891_s25, 0 }
  0x4f   : > { %246 = sbr.rel (%p1899_p3) target bundleno = 412 (0x19c), region = 36  ;;  %s1074_s7 = sshll.u32 (!%p1899_p3), %s1635_s12, 7 }
  0x50   : > { %s249_s24 = scalar_lea.sflag (!%p1899_p3), [#allocation3], %s1635_s12  ;;  %s1639_s29 = scalar_lea.vmem (!%p1899_p3), [#allocation2], %s1074_s7 }
  0x56   : > { %1410 = dma.done.wait (%p1900_p7), %s249_s24, 2048  }
  0x57   : > { %1412 = vsyncadd (%p1900_p7), %s249_s24, 4294965248  ;;  %p1901_p13 = scmp.ne.s32.totalorder %s1889_s23, 0 }
  0x59   : > { %1414 = dma.done.wait (%p1901_p13), [#allocation6], 1024  }
  0x5a   : > { %1416 = vsyncadd (%p1901_p13), [#allocation6], 4294966272  ;;  %v1275_v0 = vld [vmem:[#allocation5] sm:$0xff]   ;;  %v1276_v1 = vld [vmem:[#allocation5 + $0x8] sm:$0xff]   ;;  %s1076_s21 = sshll.u32 %s1635_s12, 8  ;;  %s1109_s28 = sshll.u32 %s1435_s18, 12 }
  0x5b   : > { %1134 = vmatprep.subr.bf16.mxu0 %v1275_v0  ;;  %1182 = vmatprep.subr.bf16.mxu1 %v1275_v0  ;;  %v1277_v2 = vld [vmem:[#allocation5 + $0x10] sm:$0xff]   ;;  %v1278_v3 = vld [vmem:[#allocation5 + $0x18] sm:$0xff]   ;;  %v1283_v4 = vld [vmem:[%s1639_s29] sm:$0xff]   ;;  %s1694_s22 = scalar_lea.vmem [#allocation7], %s1076_s21  ;;  %s1823_s9 = scalar_lea.hbm %s1884_s4, %s1109_s28 }
  0x5c   : > { %1135 = vmatpush3.bf16.msra.mxu0 %v1275_v0  ;;  %1190 = vmatpush3.bf16.msra.mxu1 %v1275_v0  ;;  %v1284_v5 = vld [vmem:[%s1639_s29 + $0x40] sm:$0xff]   ;;  %v1280_v7 = vld [vmem:[#allocation5 + $0x28] sm:$0xff]   ;;  %v1281_v8 = vld [vmem:[#allocation5 + $0x30] sm:$0xff]   ;;  %s936_s8 = sshll.u32 %s1694_s22, 4  ;;  %s920_s11 = scalar_lea.sflag [#allocation4], %s1635_s12  ;;  %s1825_s8 = int_to_ptr.vmem [resolvable:$true] %s936_s8 }
  0x5d   : > { %1136 = vmatprep.subr.bf16.mxu0 %v1276_v1  ;;  %1183 = vmatprep.subr.bf16.mxu1 %v1276_v1  ;;  %v1279_v6 = vld [vmem:[#allocation5 + $0x20] sm:$0xff]   ;;  %v1282_v9 = vld [vmem:[#allocation5 + $0x38] sm:$0xff]   ;;  %v1285_v10 = vld [vmem:[%s1639_s29 + $0x8] sm:$0xff]   ;;  %s1357_s13 = scalar_lea.vmem %s1825_s8, 4096  ;;  %s1449_s7 = smov [#allocation7]  }
  0x5e   : > { %1150 = vmatprep.mubr.bf16.mxu0 %v1283_v4  ;;  %1166 = vmatprep.mubr.bf16.mxu1 %v1284_v5  ;;  %v1286_v11 = vld [vmem:[%s1639_s29 + $0x48] sm:$0xff]   ;;  %v1287_v12 = vld [vmem:[%s1639_s29 + $0x10] sm:$0xff]   ;;  %v1289_v14 = vld [vmem:[%s1639_s29 + $0x18] sm:$0xff]   ;;  %p1358_p4 = scmp.ne.s32.totalorder %s1825_s8, %s1357_s13  ;;  %s1361_s24 = sshll.u32 %s1449_s7, 4  ;;  %s1362_s24 = int_to_ptr.vmem [resolvable:$false] %s1361_s24 }
  0x5f   : > { %v1288_v13 = vld [vmem:[%s1639_s29 + $0x50] sm:$0xff]   ;;  %v1290_v15 = vld [vmem:[%s1639_s29 + $0x58] sm:$0xff]   ;;  %v1291_v16 = vld [vmem:[%s1639_s29 + $0x20] sm:$0xff]   ;;  %p1364_p12 = scmp.lt.s32.totalorder %s1825_s8, %s1362_s24 }
  0x60   : > { %1137 = vmatpush3.bf16.msra.mxu0 %v1276_v1  ;;  %1191 = vmatpush3.bf16.msra.mxu1 %v1276_v1  ;;  %v1292_v17 = vld [vmem:[%s1639_s29 + $0x60] sm:$0xff]   ;;  %v1293_v18 = vld [vmem:[%s1639_s29 + $0x28] sm:$0xff]   ;;  %v1295_v20 = vld [vmem:[%s1639_s29 + $0x30] sm:$0xff]   ;;  %p1359_p6 = pnand %p1358_p4, %p1576_p10 }
  0x61   : > { %1138 = vmatprep.subr.bf16.mxu0 %v1277_v2  ;;  %1184 = vmatprep.subr.bf16.mxu1 %v1277_v2  ;;  %v1294_v19 = vld [vmem:[%s1639_s29 + $0x68] sm:$0xff]   ;;  %v1296_v21 = vld [vmem:[%s1639_s29 + $0x70] sm:$0xff]   ;;  %v1297_v22 = vld [vmem:[%s1639_s29 + $0x38] sm:$0xff]  }
  0x62   : > { %v1298_v23 = vld [vmem:[%s1639_s29 + $0x78] sm:$0xff]   ;;  %v1668_v24 = vld [vmem:[%s1882_s2] ss:$0 sm:$0xff]  ;;  %p1360_p8 = pneg %p1359_p6  ;;  %s1363_s29 = scalar_lea.vmem %s1362_s24, 8192 }
  0x63   : > { %v1673_v26 = vld [vmem:[%s1883_s3] ss:$0 sm:$0xff]  ;;  %p1365_p11 = scmp.lt.s32.totalorder %s1363_s29, %s1357_s13 }
  0x64   : > { %1139 = vmatpush3.bf16.msra.mxu0 %v1277_v2  ;;  %1192 = vmatpush3.bf16.msra.mxu1 %v1277_v2 }
  0x65   : > { %1140 = vmatprep.subr.bf16.mxu0 %v1278_v3  ;;  %1185 = vmatprep.subr.bf16.mxu1 %v1278_v3  ;;  %p1366_p0 = por %p1365_p11, %p1364_p12 }
  0x67   : > { %p1367_p5 = pnand %p1366_p0, %p1360_p8 }
  0x68   : > { %1141 = vmatpush3.bf16.msra.mxu0 %v1278_v3  ;;  %1193 = vmatpush3.bf16.msra.mxu1 %v1278_v3 }
  0x69   : > { %1142 = vmatprep.subr.bf16.mxu0 %v1279_v6  ;;  %1186 = vmatprep.subr.bf16.mxu1 %v1279_v6 }
  0x6c   : > { %1143 = vmatpush3.bf16.msra.mxu0 %v1279_v6  ;;  %1194 = vmatpush3.bf16.msra.mxu1 %v1279_v6 }
  0x6d   : > { %1144 = vmatprep.subr.bf16.mxu0 %v1280_v7  ;;  %1187 = vmatprep.subr.bf16.mxu1 %v1280_v7 }
  0x70   : > { %1145 = vmatpush3.bf16.msra.mxu0 %v1280_v7  ;;  %1195 = vmatpush3.bf16.msra.mxu1 %v1280_v7 }
  0x71   : > { %1146 = vmatprep.subr.bf16.mxu0 %v1281_v8  ;;  %1188 = vmatprep.subr.bf16.mxu1 %v1281_v8 }
  0x74   : > { %1147 = vmatpush3.bf16.msra.mxu0 %v1281_v8  ;;  %1196 = vmatpush3.bf16.msra.mxu1 %v1281_v8 }
  0x75   : > { %1148 = vmatprep.subr.bf16.mxu0 %v1282_v9  ;;  %1189 = vmatprep.subr.bf16.mxu1 %v1282_v9 }
  0x78   : > { %1149 = vmatpush3.bf16.msra.mxu0 %v1282_v9  ;;  %1197 = vmatpush3.bf16.msra.mxu1 %v1282_v9 }
  0x7b   : > { %1151 = vmatmul.mubr.bf16.vlgmr.msra.gmra.mrb[0].mxu0 %v1285_v10  ;;  %1167 = vmatmul.mubr.bf16.vlgmr.msra.gmra.mrb[0].mxu1 %v1286_v11 }
  0x7c   : > { %1154 = vmatprep.mubr.bf16.mxu0 %v1287_v12  ;;  %1170 = vmatprep.mubr.bf16.mxu1 %v1288_v13 }
  0x83   : > { %1155 = vmatmul.mubr.bf16.gmra.mrb[4].mxu0 %v1289_v14  ;;  %1171 = vmatmul.mubr.bf16.gmra.mrb[4].mxu1 %v1290_v15 }
  0x84   : > { %1158 = vmatprep.mubr.bf16.mxu0 %v1291_v16  ;;  %1174 = vmatprep.mubr.bf16.mxu1 %v1292_v17 }
  0x8b   : > { %1159 = vmatmul.mubr.bf16.gmra.mrb[8].mxu0 %v1293_v18  ;;  %1175 = vmatmul.mubr.bf16.gmra.mrb[8].mxu1 %v1294_v19 }
  0x8c   : > { %1162 = vmatprep.mubr.bf16.mxu0 %v1295_v20  ;;  %1178 = vmatprep.mubr.bf16.mxu1 %v1296_v21 }
  0x93   : > { %1163 = vmatmul.mubr.bf16.gmra.mrb[12].mxu0 %v1297_v22  ;;  %1179 = vmatmul.mubr.bf16.gmra.mrb[12].mxu1 %v1298_v23 }
 0x14e   : > { %v1152_v25 = vpop.f32.mrb[0].mxu0  ;;  %v1168_v27 = vpop.f32.mrb[0].mxu1 }
 0x14f   : > { %v658_v28 = vmul.f32 %v1152_v25, %v1668_v24  ;;  %v674_v29 = vmul.f32 %v1168_v27, %v1668_v24  ;;  %v522_v30 = vpop.f32.mrb[1].mxu0  ;;  %v586_v31 = vpop.f32.mrb[1].mxu1 }
 0x150   : > { %v656_v32 = vmul.f32 %v1668_v24, %v522_v30  ;;  %v672_v33 = vmul.f32 %v1668_v24, %v586_v31  ;;  %v1153_v34 = vpop.f32.mrb[2].mxu0  ;;  %v1169_v35 = vpop.f32.mrb[2].mxu1 }
 0x151   : > { %v697_v36 = vadd.f32 %v1673_v26, %v658_v28  ;;  %v713_v37 = vadd.f32 %v1673_v26, %v674_v29  ;;  %v659_v38 = vmul.f32 %v1153_v34, %v1668_v24  ;;  %v675_v39 = vmul.f32 %v1169_v35, %v1668_v24  ;;  %v525_v40 = vpop.f32.mrb[3].mxu0  ;;  %v589_v41 = vpop.f32.mrb[3].mxu1 }
 0x152   : > { %v695_v42 = vadd.f32 %v1673_v26, %v656_v32  ;;  %v711_v43 = vadd.f32 %v1673_v26, %v672_v33  ;;  %v657_v44 = vmul.f32 %v1668_v24, %v525_v40  ;;  %v673_v45 = vmul.f32 %v1668_v24, %v589_v41 }
 0x153   : > { %v729_v46 = vadd.f32 3.0, %v697_v36  ;;  %v745_v47 = vadd.f32 3.0, %v713_v37  ;;  %v698_v48 = vadd.f32 %v1673_v26, %v659_v38  ;;  %v714_v49 = vadd.f32 %v1673_v26, %v675_v39 }
 0x154   : > { %v727_v50 = vadd.f32 3.0, %v695_v42  ;;  %v743_v51 = vadd.f32 3.0, %v711_v43  ;;  %v696_v52 = vadd.f32 %v1673_v26, %v657_v44  ;;  %v712_v53 = vadd.f32 %v1673_v26, %v673_v45 }
 0x155   : > { %v761_v54 = vmax.f32 %v729_v46, 0.0  ;;  %v777_v55 = vmax.f32 %v745_v47, 0.0  ;;  %v730_v56 = vadd.f32 3.0, %v698_v48  ;;  %v746_v57 = vadd.f32 3.0, %v714_v49 }
 0x156   : > { %v759_v58 = vmax.f32 %v727_v50, 0.0  ;;  %v775_v59 = vmax.f32 %v743_v51, 0.0  ;;  %v728_v60 = vadd.f32 3.0, %v696_v52  ;;  %v744_v61 = vadd.f32 3.0, %v712_v53  ;;  %v1156_v62 = vpop.f32.mrb[4].mxu0  ;;  %v1172_v63 = vpop.f32.mrb[4].mxu1 }
 0x157   : > { %v793_v0 = vmin.f32 %v761_v54, 6.0  ;;  %v809_v1 = vmin.f32 %v777_v55, 6.0  ;;  %v762_v2 = vmax.f32 %v730_v56, 0.0  ;;  %v778_v3 = vmax.f32 %v746_v57, 0.0  ;;  %v538_v4 = vpop.f32.mrb[5].mxu0  ;;  %v602_v5 = vpop.f32.mrb[5].mxu1 }
 0x158   : > { %v791_v6 = vmin.f32 %v759_v58, 6.0  ;;  %v807_v7 = vmin.f32 %v775_v59, 6.0  ;;  %v760_v8 = vmax.f32 %v728_v60, 0.0  ;;  %v776_v9 = vmax.f32 %v744_v61, 0.0  ;;  %v1157_v10 = vpop.f32.mrb[6].mxu0  ;;  %v1173_v11 = vpop.f32.mrb[6].mxu1 }
 0x159   : > { %v825_v12 = vmul.f32 0.16666667, %v793_v0  ;;  %v841_v13 = vmul.f32 0.16666667, %v809_v1  ;;  %v794_v14 = vmin.f32 %v762_v2, 6.0  ;;  %v810_v15 = vmin.f32 %v778_v3, 6.0 }
 0x15a   : > { %v823_v16 = vmul.f32 0.16666667, %v791_v6  ;;  %v839_v17 = vmul.f32 0.16666667, %v807_v7  ;;  %v792_v18 = vmin.f32 %v760_v8, 6.0  ;;  %v808_v19 = vmin.f32 %v776_v9, 6.0 }
 0x15b   : > { %v857_v20 = vmul.f32 %v825_v12, %v697_v36  ;;  %v873_v21 = vmul.f32 %v841_v13, %v713_v37  ;;  %v826_v22 = vmul.f32 0.16666667, %v794_v14  ;;  %v842_v23 = vmul.f32 0.16666667, %v810_v15  ;;  %v541_v25 = vpop.f32.mrb[7].mxu0  ;;  %v605_v27 = vpop.f32.mrb[7].mxu1 }
 0x15c   : > { %v855_v28 = vmul.f32 %v823_v16, %v695_v42  ;;  %v871_v29 = vmul.f32 %v839_v17, %v711_v43  ;;  %v824_v30 = vmul.f32 0.16666667, %v792_v18  ;;  %v840_v31 = vmul.f32 0.16666667, %v808_v19 }
 0x15d   : > { %889 = vst [vmem:[%s1694_s22 + $0x10] sm:$0xff] %v857_v20  ;;  %905 = vst [vmem:[%s1694_s22 + $0x90] sm:$0xff] %v873_v21  ;;  %v858_v32 = vmul.f32 %v826_v22, %v698_v48  ;;  %v874_v33 = vmul.f32 %v842_v23, %v714_v49  ;;  %v662_v34 = vmul.f32 %v1156_v62, %v1668_v24 }
 0x15e   : > { %v678_v35 = vmul.f32 %v1172_v63, %v1668_v24  ;;  %887 = vst [vmem:[%s1694_s22] sm:$0xff] %v855_v28  ;;  %903 = vst [vmem:[%s1694_s22 + $0x80] sm:$0xff] %v871_v29  ;;  %v856_v36 = vmul.f32 %v824_v30, %v696_v52  ;;  %v872_v37 = vmul.f32 %v840_v31, %v712_v53  ;;  %v1704_v40 = vpop.f32.mrb[8].mxu0  ;;  %v1706_v41 = vpop.f32.mrb[8].mxu1 }
 0x15f   : > { %v660_v38 = vmul.f32 %v1668_v24, %v538_v4  ;;  %v676_v39 = vmul.f32 %v1668_v24, %v602_v5  ;;  %890 = vst [vmem:[%s1694_s22 + $0x18] sm:$0xff] %v858_v32  ;;  %906 = vst [vmem:[%s1694_s22 + $0x98] sm:$0xff] %v874_v33  ;;  %v701_v42 = vadd.f32 %v1673_v26, %v662_v34  ;;  %v1714_v46 = vpop.f32.mrb[9].mxu0  ;;  %v1716_v47 = vpop.f32.mrb[9].mxu1 }
 0x160   : > { %v717_v43 = vadd.f32 %v1673_v26, %v678_v35  ;;  %v663_v44 = vmul.f32 %v1157_v10, %v1668_v24  ;;  %v679_v45 = vmul.f32 %v1173_v11, %v1668_v24  ;;  %888 = vst [vmem:[%s1694_s22 + $0x8] sm:$0xff] %v856_v36  ;;  %904 = vst [vmem:[%s1694_s22 + $0x88] sm:$0xff] %v872_v37  ;;  %v1724_v52 = vpop.f32.mrb[10].mxu0  ;;  %v1726_v53 = vpop.f32.mrb[10].mxu1 }
 0x161   : > { %v699_v48 = vadd.f32 %v1673_v26, %v660_v38  ;;  %v715_v49 = vadd.f32 %v1673_v26, %v676_v39  ;;  %v661_v50 = vmul.f32 %v1668_v24, %v541_v25  ;;  %v677_v51 = vmul.f32 %v1668_v24, %v605_v27  ;;  %v1730_v58 = vpop.f32.mrb[11].mxu0  ;;  %v1732_v59 = vpop.f32.mrb[11].mxu1 }
 0x162   : > { %v733_v54 = vadd.f32 3.0, %v701_v42  ;;  %v749_v55 = vadd.f32 3.0, %v717_v43  ;;  %v702_v56 = vadd.f32 %v1673_v26, %v663_v44  ;;  %v718_v57 = vadd.f32 %v1673_v26, %v679_v45 }
 0x163   : > { %v731_v60 = vadd.f32 3.0, %v699_v48  ;;  %v747_v61 = vadd.f32 3.0, %v715_v49  ;;  %v700_v62 = vadd.f32 %v1673_v26, %v661_v50  ;;  %v716_v63 = vadd.f32 %v1673_v26, %v677_v51 }
 0x164   : > { %v765_v0 = vmax.f32 %v733_v54, 0.0  ;;  %v781_v1 = vmax.f32 %v749_v55, 0.0  ;;  %v734_v2 = vadd.f32 3.0, %v702_v56  ;;  %v750_v3 = vadd.f32 3.0, %v718_v57 }
 0x165   : > { %v763_v4 = vmax.f32 %v731_v60, 0.0  ;;  %v779_v5 = vmax.f32 %v747_v61, 0.0  ;;  %v732_v6 = vadd.f32 3.0, %v700_v62  ;;  %v748_v7 = vadd.f32 3.0, %v716_v63 }
 0x166   : > { %v797_v8 = vmin.f32 %v765_v0, 6.0  ;;  %v813_v9 = vmin.f32 %v781_v1, 6.0  ;;  %v766_v10 = vmax.f32 %v734_v2, 0.0  ;;  %v782_v11 = vmax.f32 %v750_v3, 0.0  ;;  %v1736_v16 = vpop.f32.mrb[12].mxu0  ;;  %v1738_v17 = vpop.f32.mrb[12].mxu1 }
 0x167   : > { %v795_v12 = vmin.f32 %v763_v4, 6.0  ;;  %v811_v13 = vmin.f32 %v779_v5, 6.0  ;;  %v764_v14 = vmax.f32 %v732_v6, 0.0  ;;  %v780_v15 = vmax.f32 %v748_v7, 0.0  ;;  %v1740_v32 = vpop.f32.mrb[13].mxu0  ;;  %v1742_v33 = vpop.f32.mrb[13].mxu1 }
 0x168   : > { %v829_v18 = vmul.f32 0.16666667, %v797_v8  ;;  %v845_v19 = vmul.f32 0.16666667, %v813_v9  ;;  %v798_v20 = vmin.f32 %v766_v10, 6.0  ;;  %v814_v21 = vmin.f32 %v782_v11, 6.0 }
 0x169   : > { %v827_v22 = vmul.f32 0.16666667, %v795_v12  ;;  %v843_v23 = vmul.f32 0.16666667, %v811_v13  ;;  %v796_v25 = vmin.f32 %v764_v14, 6.0  ;;  %v812_v27 = vmin.f32 %v780_v15, 6.0 }
 0x16a   : > { %v861_v28 = vmul.f32 %v829_v18, %v701_v42  ;;  %v877_v29 = vmul.f32 %v845_v19, %v717_v43  ;;  %v830_v30 = vmul.f32 0.16666667, %v798_v20  ;;  %v846_v31 = vmul.f32 0.16666667, %v814_v21  ;;  %v1744_v38 = vpop.f32.mrb[14].mxu0  ;;  %v1746_v39 = vpop.f32.mrb[14].mxu1 }
 0x16b   : > { %v859_v34 = vmul.f32 %v827_v22, %v699_v48  ;;  %v875_v35 = vmul.f32 %v843_v23, %v715_v49  ;;  %v828_v36 = vmul.f32 0.16666667, %v796_v25  ;;  %v844_v37 = vmul.f32 0.16666667, %v812_v27  ;;  %v1754_v48 = vpop.f32.mrb[15].mxu0  ;;  %v1756_v49 = vpop.f32.mrb[15].mxu1 }
 0x16c   : > { %893 = vst [vmem:[%s1694_s22 + $0x30] sm:$0xff] %v861_v28  ;;  %909 = vst [vmem:[%s1694_s22 + $0xb0] sm:$0xff] %v877_v29  ;;  %v862_v42 = vmul.f32 %v830_v30, %v702_v56  ;;  %v878_v43 = vmul.f32 %v846_v31, %v718_v57  ;;  %v666_v44 = vmul.f32 %v1704_v40, %v1668_v24 }
 0x16d   : > { %v682_v45 = vmul.f32 %v1706_v41, %v1668_v24  ;;  %891 = vst [vmem:[%s1694_s22 + $0x20] sm:$0xff] %v859_v34  ;;  %907 = vst [vmem:[%s1694_s22 + $0xa0] sm:$0xff] %v875_v35  ;;  %v860_v50 = vmul.f32 %v828_v36, %v700_v62  ;;  %v876_v51 = vmul.f32 %v844_v37, %v716_v63 }
 0x16e   : > { %v664_v54 = vmul.f32 %v1668_v24, %v1714_v46  ;;  %v680_v55 = vmul.f32 %v1668_v24, %v1716_v47  ;;  %894 = vst [vmem:[%s1694_s22 + $0x38] sm:$0xff] %v862_v42  ;;  %910 = vst [vmem:[%s1694_s22 + $0xb8] sm:$0xff] %v878_v43  ;;  %v705_v40 = vadd.f32 %v1673_v26, %v666_v44 }
 0x16f   : > { %v721_v41 = vadd.f32 %v1673_v26, %v682_v45  ;;  %v667_v56 = vmul.f32 %v1724_v52, %v1668_v24  ;;  %v683_v57 = vmul.f32 %v1726_v53, %v1668_v24  ;;  %892 = vst [vmem:[%s1694_s22 + $0x28] sm:$0xff] %v860_v50  ;;  %908 = vst [vmem:[%s1694_s22 + $0xa8] sm:$0xff] %v876_v51 }
 0x170   : > { %v703_v60 = vadd.f32 %v1673_v26, %v664_v54  ;;  %v719_v46 = vadd.f32 %v1673_v26, %v680_v55  ;;  %v665_v47 = vmul.f32 %v1668_v24, %v1730_v58  ;;  %v681_v61 = vmul.f32 %v1668_v24, %v1732_v59 }
 0x171   : > { %v737_v62 = vadd.f32 3.0, %v705_v40  ;;  %v753_v63 = vadd.f32 3.0, %v721_v41  ;;  %v706_v0 = vadd.f32 %v1673_v26, %v667_v56  ;;  %v722_v52 = vadd.f32 %v1673_v26, %v683_v57 }
 0x172   : > { %v735_v1 = vadd.f32 3.0, %v703_v60  ;;  %v751_v53 = vadd.f32 3.0, %v719_v46  ;;  %v704_v2 = vadd.f32 %v1673_v26, %v665_v47  ;;  %v720_v3 = vadd.f32 %v1673_v26, %v681_v61 }
 0x173   : > { %v769_v4 = vmax.f32 %v737_v62, 0.0  ;;  %v785_v5 = vmax.f32 %v753_v63, 0.0  ;;  %v738_v6 = vadd.f32 3.0, %v706_v0  ;;  %v754_v7 = vadd.f32 3.0, %v722_v52 }
 0x174   : > { %v767_v58 = vmax.f32 %v735_v1, 0.0  ;;  %v783_v8 = vmax.f32 %v751_v53, 0.0  ;;  %v736_v9 = vadd.f32 3.0, %v704_v2  ;;  %v752_v59 = vadd.f32 3.0, %v720_v3 }
 0x175   : > { %v801_v10 = vmin.f32 %v769_v4, 6.0  ;;  %v817_v11 = vmin.f32 %v785_v5, 6.0  ;;  %v770_v12 = vmax.f32 %v738_v6, 0.0  ;;  %v786_v13 = vmax.f32 %v754_v7, 0.0 }
 0x176   : > { %v799_v14 = vmin.f32 %v767_v58, 6.0  ;;  %v815_v15 = vmin.f32 %v783_v8, 6.0  ;;  %v768_v18 = vmax.f32 %v736_v9, 0.0  ;;  %v784_v19 = vmax.f32 %v752_v59, 0.0 }
 0x177   : > { %v833_v20 = vmul.f32 0.16666667, %v801_v10  ;;  %v849_v21 = vmul.f32 0.16666667, %v817_v11  ;;  %v802_v22 = vmin.f32 %v770_v12, 6.0  ;;  %v818_v23 = vmin.f32 %v786_v13, 6.0 }
 0x178   : > { %v831_v25 = vmul.f32 0.16666667, %v799_v14  ;;  %v847_v27 = vmul.f32 0.16666667, %v815_v15  ;;  %v800_v28 = vmin.f32 %v768_v18, 6.0  ;;  %v816_v29 = vmin.f32 %v784_v19, 6.0 }
 0x179   : > { %v865_v30 = vmul.f32 %v833_v20, %v705_v40  ;;  %v881_v31 = vmul.f32 %v849_v21, %v721_v41  ;;  %v834_v34 = vmul.f32 0.16666667, %v802_v22  ;;  %v850_v35 = vmul.f32 0.16666667, %v818_v23 }
 0x17a   : > { %v863_v36 = vmul.f32 %v831_v25, %v703_v60  ;;  %v879_v37 = vmul.f32 %v847_v27, %v719_v46  ;;  %v832_v42 = vmul.f32 0.16666667, %v800_v28  ;;  %v848_v43 = vmul.f32 0.16666667, %v816_v29 }
 0x17b   : > { %897 = vst [vmem:[%s1694_s22 + $0x50] sm:$0xff] %v865_v30  ;;  %913 = vst [vmem:[%s1694_s22 + $0xd0] sm:$0xff] %v881_v31  ;;  %v866_v44 = vmul.f32 %v834_v34, %v706_v0  ;;  %v882_v45 = vmul.f32 %v850_v35, %v722_v52  ;;  %v670_v50 = vmul.f32 %v1736_v16, %v1668_v24 }
 0x17c   : > { %v686_v51 = vmul.f32 %v1738_v17, %v1668_v24  ;;  %895 = vst [vmem:[%s1694_s22 + $0x40] sm:$0xff] %v863_v36  ;;  %911 = vst [vmem:[%s1694_s22 + $0xc0] sm:$0xff] %v879_v37  ;;  %v864_v54 = vmul.f32 %v832_v42, %v704_v2  ;;  %v880_v55 = vmul.f32 %v848_v43, %v720_v3 }
 0x17d   : > { %v668_v40 = vmul.f32 %v1668_v24, %v1740_v32  ;;  %v684_v41 = vmul.f32 %v1668_v24, %v1742_v33  ;;  %898 = vst [vmem:[%s1694_s22 + $0x58] sm:$0xff] %v866_v44  ;;  %914 = vst [vmem:[%s1694_s22 + $0xd8] sm:$0xff] %v882_v45  ;;  %v709_v56 = vadd.f32 %v1673_v26, %v670_v50 }
 0x17e   : > { %v725_v57 = vadd.f32 %v1673_v26, %v686_v51  ;;  %v671_v16 = vmul.f32 %v1744_v38, %v1668_v24  ;;  %v687_v17 = vmul.f32 %v1746_v39, %v1668_v24  ;;  %896 = vst [vmem:[%s1694_s22 + $0x48] sm:$0xff] %v864_v54  ;;  %912 = vst [vmem:[%s1694_s22 + $0xc8] sm:$0xff] %v880_v55 }
 0x17f   : > { %v707_v60 = vadd.f32 %v1673_v26, %v668_v40  ;;  %v723_v32 = vadd.f32 %v1673_v26, %v684_v41  ;;  %v669_v33 = vmul.f32 %v1668_v24, %v1754_v48  ;;  %v685_v46 = vmul.f32 %v1668_v24, %v1756_v49 }
 0x180   : > { %v741_v47 = vadd.f32 3.0, %v709_v56  ;;  %v757_v61 = vadd.f32 3.0, %v725_v57  ;;  %v710_v62 = vadd.f32 %v1673_v26, %v671_v16  ;;  %v726_v38 = vadd.f32 %v1673_v26, %v687_v17 }
 0x181   : > { %v739_v63 = vadd.f32 3.0, %v707_v60  ;;  %v755_v39 = vadd.f32 3.0, %v723_v32  ;;  %v708_v0 = vadd.f32 %v1673_v26, %v669_v33  ;;  %v724_v52 = vadd.f32 %v1673_v26, %v685_v46 }
 0x182   : > { %v773_v1 = vmax.f32 %v741_v47, 0.0  ;;  %v789_v53 = vmax.f32 %v757_v61, 0.0  ;;  %v742_v48 = vadd.f32 3.0, %v710_v62  ;;  %v758_v2 = vadd.f32 3.0, %v726_v38 }
 0x183   : > { %v771_v3 = vmax.f32 %v739_v63, 0.0  ;;  %v787_v24 = vmax.f32 %v755_v39, 0.0  ;;  %v740_v49 = vadd.f32 3.0, %v708_v0  ;;  %v756_v4 = vadd.f32 3.0, %v724_v52 }
 0x184   : > { %v805_v5 = vmin.f32 %v773_v1, 6.0  ;;  %v821_v6 = vmin.f32 %v789_v53, 6.0  ;;  %v774_v7 = vmax.f32 %v742_v48, 0.0  ;;  %v790_v58 = vmax.f32 %v758_v2, 0.0 }
 0x185   : > { %v803_v8 = vmin.f32 %v771_v3, 6.0  ;;  %v819_v9 = vmin.f32 %v787_v24, 6.0  ;;  %v772_v59 = vmax.f32 %v740_v49, 0.0  ;;  %v788_v10 = vmax.f32 %v756_v4, 0.0 }
 0x186   : > { %v837_v26 = vmul.f32 0.16666667, %v805_v5  ;;  %v853_v11 = vmul.f32 0.16666667, %v821_v6  ;;  %v806_v12 = vmin.f32 %v774_v7, 6.0  ;;  %v822_v13 = vmin.f32 %v790_v58, 6.0 }
 0x187   : > { %v835_v14 = vmul.f32 0.16666667, %v803_v8  ;;  %v851_v15 = vmul.f32 0.16666667, %v819_v9  ;;  %v804_v18 = vmin.f32 %v772_v59, 6.0  ;;  %v820_v19 = vmin.f32 %v788_v10, 6.0 }
 0x188   : > { %v869_v20 = vmul.f32 %v837_v26, %v709_v56  ;;  %v885_v21 = vmul.f32 %v853_v11, %v725_v57  ;;  %v838_v22 = vmul.f32 0.16666667, %v806_v12  ;;  %v854_v23 = vmul.f32 0.16666667, %v822_v13 }
 0x189   : > { %v867_v25 = vmul.f32 %v835_v14, %v707_v60  ;;  %v883_v27 = vmul.f32 %v851_v15, %v723_v32  ;;  %v836_v28 = vmul.f32 0.16666667, %v804_v18  ;;  %v852_v29 = vmul.f32 0.16666667, %v820_v19 }
 0x18a   : > { %901 = vst [vmem:[%s1694_s22 + $0x70] sm:$0xff] %v869_v20  ;;  %917 = vst [vmem:[%s1694_s22 + $0xf0] sm:$0xff] %v885_v21  ;;  %v870_v30 = vmul.f32 %v838_v22, %v710_v62  ;;  %v886_v31 = vmul.f32 %v854_v23, %v726_v38 }
 0x18b   : > { %899 = vst [vmem:[%s1694_s22 + $0x60] sm:$0xff] %v867_v25  ;;  %915 = vst [vmem:[%s1694_s22 + $0xe0] sm:$0xff] %v883_v27  ;;  %v868_v34 = vmul.f32 %v836_v28, %v708_v0  ;;  %v884_v35 = vmul.f32 %v852_v29, %v724_v52 }
 0x18c   : > { %902 = vst [vmem:[%s1694_s22 + $0x78] sm:$0xff] %v870_v30  ;;  %918 = vst [vmem:[%s1694_s22 + $0xf8] sm:$0xff] %v886_v31 }
 0x18d   : > { %900 = vst [vmem:[%s1694_s22 + $0x68] sm:$0xff] %v868_v34  ;;  %916 = vst [vmem:[%s1694_s22 + $0xe8] sm:$0xff] %v884_v35 }
 0x18e   : > { %1370 = shalt.err (!%p1367_p5)
}
 0x18f   : > { %s1371_s23 = scalar_lea.hbm %s1823_s9, 4096  ;;  %s1375_s14 = scalar_lea.hbm %s1884_s4, 8192 }
 0x190   : > { %p1372_p9 = scmp.ne.s32.totalorder %s1823_s9, %s1371_s23  ;;  %p1376_p3 = scmp.lt.u32.totalorder %s1823_s9, %s1884_s4 }
 0x191   : > { %p1377_p7 = scmp.lt.u32.totalorder %s1375_s14, %s1371_s23  ;;  %p1379_p4 = scmp.lt.u32.totalorder %s1371_s23, %s1823_s9 }
 0x192   : > { %p1373_p1 = pnand %p1372_p9, %p1576_p10 }
 0x193   : > { %p1378_p13 = por %p1377_p7, %p1376_p3 }
 0x194   : > { %p1374_p2 = pneg %p1373_p1 }
 0x195   : > { %p1380_p6 = por %p1379_p4, %p1378_p13 }
 0x197   : > { %p1381_p8 = pnand %p1380_p6, %p1374_p2 }
 0x199   : > { %1384 = shalt.err (!%p1381_p8)
}
 0x19a   : > { %s1450_s28 = smov 128   ;;  %s1451_s18 = smov 8  }
 0x19b   : > { %1204 = dma.vmem_to_hbm [thread:$0]  (%p1576_p10), %s1825_s8, 4096, %s1823_s9, %s920_s11, %s1450_s28, %s1450_s28, %s1451_s18  }
 0x19c PF: > { %s951_s6 = sand.u32 1, %s1423_s15   ;;  %p1902_p12 = scmp.ne.s32.totalorder %s1892_s26, 0 }
 0x19d   : > { %p1903_p11 = scmp.ge.s32.totalorder %s1443_s20, 2  ;;  %s952_s13 = scalar_lea.sflag [#allocation4], %s951_s6 }
 0x19f   : > { %p1215_p0 = pnand %p1903_p11, %p1902_p12 }
 0x1a1   : > { %1418 = dma.done.wait (!%p1215_p0), %s952_s13, 4096  }
 0x1a2   : > { %1420 = vsyncadd (!%p1215_p0), %s952_s13, 4294963200  ;;  %s21_s20 = sadd.s32 1, %s1443_s20   ;;  %s1904_s15 = smov %s1427_s16 }
 0x1a3   : > { %p18_p5 = scmp.ge.s32.totalorder %s21_s20, 4   ;;  %s1905_s16 = smov %s1431_s17 }
 0x1a4   : > { %s1906_s17 = smov %s1585_s10  ;;  %s1907_s18 = smov %s1439_s19 }
 0x1a5   : > { %s1908_s19 = smov %s1910_s5  ;;  %20 = sbr.rel (!%p18_p5) target bundleno = 7 (0x7), region = 92 }
 0x1ac   :  { %957 = vsyncpa [#allocation3], 1 }
 0x1ad   :  { %959 = vsyncpa [#allocation3 + $0x1], 1 }
 0x1ae   :  { %960 = vsyncpa [#allocation6], 1 }
 0x1af   :  { %961 = vsyncpa [#allocation4], 1 }
 0x1b0   :  { %963 = vsyncpa [#allocation4 + $0x1], 1 }

</bundles_post_ra>
